<compile_context>
chip_gen: v7x
topology: tpu7x:2x2x1
jax: 0.10.0
libtpu: 0.0.40
codegen_flags: <defaults>
</compile_context>

<pallas_src>
import jax
import jax.numpy as jnp
from jax.experimental import pallas as pl
from jax.experimental.pallas import tpu as pltpu

BN_EPS = 1e-5
LANE = 128


# ---------------------------------------------------------------------------
# Phase 1: conv1 (per-tile im2col + one MXU matmul) + partial BN1 stats.
def _conv_stats_kernel(xpad_ref, w_ref, acc_ref, sum_ref, sq_ref, patch_ref):
    # xpad_ref : (1, H+2, W+2, Cp) f32   whole padded image (resident per n)
    # w_ref    : (9*Cp, Cp)        compute dtype
    # acc_ref  : (1, TH, W, Cp)    f32   raw conv1 output tile
    # sum/sq   : (1, 1, 1, Cp)     f32   per-tile partial stats
    # patch_ref: (1, TH, W, 9*Cp)  compute dtype, per-tile im2col scratch
    _, TH, W, Cp = acc_ref.shape
    t = pl.program_id(1)
    r0 = t * TH
    cdt = patch_ref.dtype

    for k in range(9):                       # 9 taps -> 128-aligned lane slabs
        ky, kx = k // 3, k % 3
        patch_ref[:, :, :, k * Cp:(k + 1) * Cp] = (
            xpad_ref[:, pl.ds(r0 + ky, TH), kx:kx + W, :].astype(cdt))

    acc = jnp.dot(patch_ref[...].reshape(TH * W, 9 * Cp), w_ref[...],
                  preferred_element_type=jnp.float32)
    sum_ref[...] = jnp.sum(acc, axis=0, keepdims=True).reshape(1, 1, 1, Cp)
    sq_ref[...] = jnp.sum(acc * acc, axis=0, keepdims=True).reshape(1, 1, 1, Cp)
    acc_ref[...] = acc.reshape(1, TH, W, Cp)


# ---------------------------------------------------------------------------
# Phase 2: BN1-normalize + ReLU (fused into the tile build), conv2, partial
# BN2 stats.  The 1-pixel halo of y1 is rebuilt per tile from neighbouring
# rows of acc1 (elementwise normalize is cheap to redo on two halo rows).
def _bn_relu_conv_stats_kernel(acc1_ref, a1_ref, b1_ref, w_ref,
                               acc2_ref, sum_ref, sq_ref,
                               y1pad_ref, patch_ref):
    # acc1_ref : (1, H, W, Cp) f32   whole conv1 output image (resident per n)
    # a1/b1    : (1, Cp) f32         folded BN1 scale / shift
    # w_ref    : (9*Cp, Cp) compute dtype
    # acc2_ref : (1, TH, W, Cp) f32
    # sum/sq   : (1, 1, 1, Cp) f32
    # y1pad_ref: (1, TH+2, W+2, Cp) f32      per-tile padded conv2 input
    # patch_ref: (1, TH, W, 9*Cp)   compute dtype
    _, TH, W, Cp = acc2_ref.shape
    t = pl.program_id(1)
    T = pl.num_programs(1)
    r0 = t * TH
    cdt = patch_ref.dtype

    a1 = a1_ref[...].reshape(1, 1, 1, Cp)
    b1 = b1_ref[...].reshape(1, 1, 1, Cp)

    def norm_relu(v):                       # (1, rows, W, Cp) f32 -> f32
        return jnp.maximum(v * a1 + b1, 0.0)

    # Scratch persists across grid steps: rewrite the whole (small) padded
    # tile every iteration, so halo zeros can never be stale.
    y1pad_ref[...] = jnp.zeros_like(y1pad_ref)
    y1pad_ref[:, 1:TH + 1, 1:W + 1, :] = norm_relu(
        acc1_ref[:, pl.ds(r0, TH), :, :])

    @pl.when(t > 0)                          # top halo row from previous tile
    def _():
        y1pad_ref[:, 0:1, 1:W + 1, :] = norm_relu(
            acc1_ref[:, pl.ds(r0 - 1, 1), :, :])

    @pl.when(t < T - 1)                      # bottom halo row from next tile
    def _():
        y1pad_ref[:, TH + 1:TH + 2, 1:W + 1, :] = norm_relu(
            acc1_ref[:, pl.ds(r0 + TH, 1), :, :])

    for k in range(9):
        ky, kx = k // 3, k % 3
        patch_ref[:, :, :, k * Cp:(k + 1) * Cp] = (
            y1pad_ref[:, ky:ky + TH, kx:kx + W, :].astype(cdt))

    acc = jnp.dot(patch_ref[...].reshape(TH * W, 9 * Cp), w_ref[...],
                  preferred_element_type=jnp.float32)
    sum_ref[...] = jnp.sum(acc, axis=0, keepdims=True).reshape(1, 1, 1, Cp)
    sq_ref[...] = jnp.sum(acc * acc, axis=0, keepdims=True).reshape(1, 1, 1, Cp)
    acc2_ref[...] = acc.reshape(1, TH, W, Cp)


# ---------------------------------------------------------------------------
# Phase 3: BN2-normalize + residual add (interior of the padded input, no
# extra residual tensor) + final ReLU.
def _bn_add_relu_kernel(acc2_ref, a2_ref, b2_ref, xpad_ref, out_ref):
    _, TH, W, Cp = out_ref.shape
    t = pl.program_id(1)
    r0 = t * TH
    a2 = a2_ref[...].reshape(1, 1, 1, Cp)
    b2 = b2_ref[...].reshape(1, 1, 1, Cp)
    res = xpad_ref[:, pl.ds(r0 + 1, TH), 1:W + 1, :]
    out_ref[...] = jnp.maximum(acc2_ref[...] * a2 + b2 + res, 0.0)


# ---------------------------------------------------------------------------
def _nbytes(shape, dtype):
    n = 1
    for d in shape:
        n *= int(d)
    return n * jnp.dtype(dtype).itemsize


def _mosaic_params(blocks, scratch):
    # vmem_limit sized from the actual block + scratch footprint with
    # headroom for the double-buffered pipeline (review item 6).
    est = 2 * sum(_nbytes(s, d) for s, d in blocks) + \
        sum(_nbytes(s, d) for s, d in scratch)
    limit = int(min(max(2 * est + (2 << 20), 16 << 20), 56 << 20))
    return pltpu.CompilerParams(
        dimension_semantics=("parallel", "parallel"),
        vmem_limit_bytes=limit)


def _pick_row_tile(H, W, Cp, compute_dtype, row_tile):
    if row_tile is not None:
        assert H % row_tile == 0, "row_tile must divide H"
        return int(row_tile)
    budget = 4 * 1024 * 1024                 # per-tile im2col scratch budget
    item = jnp.dtype(compute_dtype).itemsize
    for th in range(H, 0, -1):
        if H % th == 0 and th * W * 9 * Cp * item <= budget:
            return th
    return 1


def _bn_fold(s, q, gamma, beta, m_total):
    # s, q: (N, T, 1, Cp) per-tile partial sums.  Tiny (Cp,)-sized XLA math.
    ssum = jnp.sum(s, axis=(0, 1, 2))
    qsum = jnp.sum(q, axis=(0, 1, 2))
    mean = ssum / m_total
    # TODO(synk): single-pass E[x^2]-E[x]^2 in f32; use a shifted variance if
    # M or the post-conv mean grows large (review correctness concern).
    var = jnp.maximum(qsum / m_total - mean * mean, 0.0)
    a = gamma * jax.lax.rsqrt(var + BN_EPS)
    b = beta - mean * a
    return a.reshape(1, -1), b.reshape(1, -1)


def residual_block_forward(x_nchw, params, *, compute_dtype=jnp.bfloat16,
                           row_tile=None):
    """ResidualBlock forward (training-mode BN). NCHW in/out (PyTorch layout).

    compute_dtype: dtype of the im2col buffers + packed conv weights.
    bf16 by default on ALL generations (v5e/v6e/v7x MXUs take bf16 with f32
    accumulation); BN statistics and epilogue math stay in f32.
    """
    x = jnp.transpose(x_nchw, (0, 2, 3, 1)).astype(jnp.float32)   # NHWC
    N, H, W, Ci = x.shape
    Co = params["w1"].shape[-1]
    assert Ci == Co, "residual add without downsample requires Ci == Co"
    Cp = ((Co + LANE - 1) // LANE) * LANE

    # One fused pad: +1 spatial halo (conv padding) and channel pad to the
    # 128-lane width.
    x_pad = jnp.pad(x, ((0, 0), (1, 1), (1, 1), (0, Cp - Ci)))

    TH = _pick_row_tile(H, W, Cp, compute_dtype, row_tile)
    T = H // TH
    grid = (N, T)
    m_total = N * H * W

    def pack_w(w):                            # HWIO (3,3,I,O) -> (9*Cp, Cp)
        wi, wo = w.shape[2], w.shape[3]
        wp = jnp.pad(w, ((0, 0), (0, 0), (0, Cp - wi), (0, Cp - wo)))
        return wp.reshape(9 * Cp, Cp).astype(compute_dtype)

    def pack_vec(v, fill):
        return jnp.pad(v.astype(jnp.float32), (0, Cp - v.shape[0]),
                       constant_values=fill)

    w1p, w2p = pack_w(params["w1"]), pack_w(params["w2"])
    g1p, be1p = pack_vec(params["g1"], 1.0), pack_vec(params["be1"], 0.0)
    g2p, be2p = pack_vec(params["g2"], 1.0), pack_vec(params["be2"], 0.0)
    # NOTE: conv biases b1/b2 are intentionally NOT used — training-mode BN
    # subtracts the batch mean, so a per-channel bias cancels exactly.

    full_img = pl.BlockSpec((1, H + 2, W + 2, Cp), lambda n, t: (n, 0, 0, 0))
    full_acc = pl.BlockSpec((1, H, W, Cp), lambda n, t: (n, 0, 0, 0))
    tile_blk = pl.BlockSpec((1, TH, W, Cp), lambda n, t: (n, t, 0, 0))
    stat_blk = pl.BlockSpec((1, 1, 1, Cp), lambda n, t: (n, t, 0, 0))
    vec_blk = pl.BlockSpec((1, Cp), lambda n, t: (0, 0))
    w_blk = pl.BlockSpec((9 * Cp, Cp), lambda n, t: (0, 0))

    # ---- phase 1: conv1 + partial BN1 stats --------------------------------
    acc1, s1, q1 = pl.pallas_call(
        _conv_stats_kernel,
        grid=grid,
        in_specs=[full_img, w_blk],
        out_specs=[tile_blk, stat_blk, stat_blk],
        out_shape=[
            jax.ShapeDtypeStruct((N, H, W, Cp), jnp.float32),
            jax.ShapeDtypeStruct((N, T, 1, Cp), jnp.float32),
            jax.ShapeDtypeStruct((N, T, 1, Cp), jnp.float32),
        ],
        scratch_shapes=[pltpu.VMEM((1, TH, W, 9 * Cp), compute_dtype)],
        compiler_params=_mosaic_params(
            [((1, H + 2, W + 2, Cp), jnp.float32),
             ((9 * Cp, Cp), compute_dtype),
             ((1, TH, W, Cp), jnp.float32),
             ((1, 1, 1, Cp), jnp.float32), ((1, 1, 1, Cp), jnp.float32)],
            [((1, TH, W, 9 * Cp), compute_dtype)]),
    )(x_pad, w1p)

    a1, b1 = _bn_fold(s1, q1, g1p, be1p, m_total)

    # ---- phase 2: BN1 + ReLU + conv2 + partial BN2 stats --------------------
    acc2, s2, q2 = pl.pallas_call(
        _bn_relu_conv_stats_kernel,
        grid=grid,
        in_specs=[full_acc, vec_blk, vec_blk, w_blk],
        out_specs=[tile_blk, stat_blk, stat_blk],
        out_shape=[
            jax.ShapeDtypeStruct((N, H, W, Cp), jnp.float32),
            jax.ShapeDtypeStruct((N, T, 1, Cp), jnp.float32),
            jax.ShapeDtypeStruct((N, T, 1, Cp), jnp.float32),
        ],
        scratch_shapes=[
            pltpu.VMEM((1, TH + 2, W + 2, Cp), jnp.float32),
            pltpu.VMEM((1, TH, W, 9 * Cp), compute_dtype),
        ],
        compiler_params=_mosaic_params(
            [((1, H, W, Cp), jnp.float32), ((1, Cp), jnp.float32),
             ((1, Cp), jnp.float32), ((9 * Cp, Cp), compute_dtype),
             ((1, TH, W, Cp), jnp.float32),
             ((1, 1, 1, Cp), jnp.float32), ((1, 1, 1, Cp), jnp.float32)],
            [((1, TH + 2, W + 2, Cp), jnp.float32),
             ((1, TH, W, 9 * Cp), compute_dtype)]),
    )(acc1, a1, b1, w2p)

    a2, b2 = _bn_fold(s2, q2, g2p, be2p, m_total)

    # ---- phase 3: BN2 + residual add + final ReLU ---------------------------
    out_p = pl.pallas_call(
        _bn_add_relu_kernel,
        grid=grid,
        in_specs=[tile_blk, vec_blk, vec_blk, full_img],
        out_specs=tile_blk,
        out_shape=jax.ShapeDtypeStruct((N, H, W, Cp), jnp.float32),
        compiler_params=_mosaic_params(
            [((1, TH, W, Cp), jnp.float32), ((1, Cp), jnp.float32),
             ((1, Cp), jnp.float32), ((1, H + 2, W + 2, Cp), jnp.float32),
             ((1, TH, W, Cp), jnp.float32)], []),
    )(acc2, a2, b2, x_pad)

    return jnp.transpose(out_p[..., :Co], (0, 3, 1, 2))          # back to NCHW


# ---------------------------------------------------------------------------
def reference_forward(x_nchw, params):
    """Pure-JAX reference (NHWC conv, with conv biases), for correctness."""
    x = jnp.transpose(x_nchw, (0, 2, 3, 1)).astype(jnp.float32)

    def conv(y, w, b):
        return jax.lax.conv_general_dilated(
            y, w, window_strides=(1, 1), padding=((1, 1), (1, 1)),
            dimension_numbers=("NHWC", "HWIO", "NHWC")) + b

    def bn(y, g, be):
        m = jnp.mean(y, axis=(0, 1, 2), keepdims=True)
        v = jnp.mean((y - m) ** 2, axis=(0, 1, 2), keepdims=True)
        return (y - m) * jax.lax.rsqrt(v + BN_EPS) * g + be

    y = jnp.maximum(bn(conv(x, params["w1"], params["b1"]),
                       params["g1"], params["be1"]), 0.0)
    y = bn(conv(y, params["w2"], params["b2"]), params["g2"], params["be2"])
    y = jnp.maximum(y + x, 0.0)
    return jnp.transpose(y, (0, 3, 1, 2))


def init_params(key, in_channels, out_channels):
    k1, k2, k3, k4 = jax.random.split(key, 4)
    return {
        # HWIO conv weights (equivalent to PyTorch OIHW transposed)
        "w1": 0.1 * jax.random.normal(k1, (3, 3, in_channels, out_channels), jnp.float32),
        "b1": 0.1 * jax.random.normal(k2, (out_channels,), jnp.float32),
        "g1": jnp.ones((out_channels,), jnp.float32),
        "be1": jnp.zeros((out_channels,), jnp.float32),
        "w2": 0.1 * jax.random.normal(k3, (3, 3, out_channels, out_channels), jnp.float32),
        "b2": 0.1 * jax.random.normal(k4, (out_channels,), jnp.float32),
        "g2": jnp.ones((out_channels,), jnp.float32),
        "be2": jnp.zeros((out_channels,), jnp.float32),
    }


if __name__ == "__main__":
    key = jax.random.PRNGKey(0)
    kx, kp = jax.random.split(key)

    in_channels = out_channels = 4
    x = jax.random.normal(kx, (2, in_channels, 16, 16), jnp.float32)   # NCHW
    params = init_params(kp, in_channels, out_channels)

    ref = jax.block_until_ready(reference_forward(x, params))

    # f32 matmul path with a forced 4-row tile (T=4): exercises top / interior
    # / bottom halo handling across row tiles; strict tolerance.
    out_f32 = jax.block_until_ready(
        residual_block_forward(x, params, compute_dtype=jnp.float32,
                               row_tile=4))
    assert out_f32.shape == (2, out_channels, 16, 16)
    err_f32 = float(jnp.max(jnp.abs(out_f32 - ref)))
    assert jnp.allclose(out_f32, ref, atol=1e-3, rtol=1e-3), err_f32

    # Default path: bf16 MXU inputs (all TPU gens), auto row tile.
    out_bf16 = jax.block_until_ready(residual_block_forward(x, params))
    assert out_bf16.shape == (2, out_channels, 16, 16)
    err_bf16 = float(jnp.max(jnp.abs(out_bf16 - ref)))
    assert jnp.allclose(out_bf16, ref, atol=0.15, rtol=0.15), err_bf16

    print("KERNEL_OK")
</pallas_src>

<mosaic_0001>
module attributes {stable_mosaic.version = 11 : i64} {
  func.func @_conv_stats_kernel(%arg0: i32, %arg1: i32, %arg2: memref<1x18x18x128xf32, #tpu.memory_space<vmem>>, %arg3: memref<1152x128xf32, #tpu.memory_space<vmem>>, %arg4: memref<1x4x16x128xf32, #tpu.memory_space<vmem>>, %arg5: memref<1x1x1x128xf32, #tpu.memory_space<vmem>>, %arg6: memref<1x1x1x128xf32, #tpu.memory_space<vmem>>, %arg7: memref<1x4x16x1152xf32, #tpu.memory_space<vmem>>) attributes {dimension_semantics = [#tpu.dimension_semantics<parallel>, #tpu.dimension_semantics<parallel>], iteration_bounds = array<i64: 2, 4>, scalar_prefetch = 0 : i64, scratch_operands = 1 : i64, tpu.core_type = #tpu.core_type<tc>, window_params = [{transform_indices = @transform_0, window_bounds = array<i64: 1, 18, 18, 128>}, {pipeline_mode = #tpu.pipeline_mode<synchronous>, transform_indices = @transform_1, window_bounds = array<i64: 1152, 128>}, {transform_indices = @transform_2, window_bounds = array<i64: 1, 4, 16, 128>}, {transform_indices = @transform_3, window_bounds = array<i64: 1, 1, 1, 128>}, {transform_indices = @transform_4, window_bounds = array<i64: 1, 1, 1, 128>}]} {
    %c4_i32 = arith.constant 4 : i32
    %0 = arith.muli %arg1, %c4_i32 : i32
    %c0_i32 = arith.constant 0 : i32
    %1 = arith.addi %0, %c0_i32 : i32
    %c0 = arith.constant 0 : index
    %2 = arith.index_cast %1 : i32 to index
    %c0_0 = arith.constant 0 : index
    %c0_1 = arith.constant 0 : index
    %3 = vector.load %arg2[%c0, %2, %c0_0, %c0_1] : memref<1x18x18x128xf32, #tpu.memory_space<vmem>>, vector<1x4x16x128xf32>
    %c0_2 = arith.constant 0 : index
    %c0_3 = arith.constant 0 : index
    %c0_4 = arith.constant 0 : index
    %c0_5 = arith.constant 0 : index
    %4 = vector.load %arg7[%c0_2, %c0_3, %c0_4, %c0_5] : memref<1x4x16x1152xf32, #tpu.memory_space<vmem>>, vector<1x4x16x128xf32>
    tpu.vector_store %arg7[%c0_2, %c0_3, %c0_4, %c0_5], %3 {strides = array<i32>} : memref<1x4x16x1152xf32, #tpu.memory_space<vmem>>, vector<1x4x16x128xf32>,
    %c0_i32_6 = arith.constant 0 : i32
    %5 = arith.addi %0, %c0_i32_6 : i32
    %c0_7 = arith.constant 0 : index
    %6 = arith.index_cast %5 : i32 to index
    %c1 = arith.constant 1 : index
    %c0_8 = arith.constant 0 : index
    %7 = vector.load %arg2[%c0_7, %6, %c1, %c0_8] : memref<1x18x18x128xf32, #tpu.memory_space<vmem>>, vector<1x4x16x128xf32>
    %c0_9 = arith.constant 0 : index
    %c0_10 = arith.constant 0 : index
    %c0_11 = arith.constant 0 : index
    %c128 = arith.constant 128 : index
    %8 = vector.load %arg7[%c0_9, %c0_10, %c0_11, %c128] : memref<1x4x16x1152xf32, #tpu.memory_space<vmem>>, vector<1x4x16x128xf32>
    tpu.vector_store %arg7[%c0_9, %c0_10, %c0_11, %c128], %7 {strides = array<i32>} : memref<1x4x16x1152xf32, #tpu.memory_space<vmem>>, vector<1x4x16x128xf32>,
    %c0_i32_12 = arith.constant 0 : i32
    %9 = arith.addi %0, %c0_i32_12 : i32
    %c0_13 = arith.constant 0 : index
    %10 = arith.index_cast %9 : i32 to index
    %c2 = arith.constant 2 : index
    %c0_14 = arith.constant 0 : index
    %11 = vector.load %arg2[%c0_13, %10, %c2, %c0_14] : memref<1x18x18x128xf32, #tpu.memory_space<vmem>>, vector<1x4x16x128xf32>
    %c0_15 = arith.constant 0 : index
    %c0_16 = arith.constant 0 : index
    %c0_17 = arith.constant 0 : index
    %c256 = arith.constant 256 : index
    %12 = vector.load %arg7[%c0_15, %c0_16, %c0_17, %c256] : memref<1x4x16x1152xf32, #tpu.memory_space<vmem>>, vector<1x4x16x128xf32>
    tpu.vector_store %arg7[%c0_15, %c0_16, %c0_17, %c256], %11 {strides = array<i32>} : memref<1x4x16x1152xf32, #tpu.memory_space<vmem>>, vector<1x4x16x128xf32>,
    %c1_i32 = arith.constant 1 : i32
    %13 = arith.addi %0, %c1_i32 : i32
    %c0_18 = arith.constant 0 : index
    %14 = arith.index_cast %13 : i32 to index
    %c0_19 = arith.constant 0 : index
    %c0_20 = arith.constant 0 : index
    %15 = vector.load %arg2[%c0_18, %14, %c0_19, %c0_20] : memref<1x18x18x128xf32, #tpu.memory_space<vmem>>, vector<1x4x16x128xf32>
    %c0_21 = arith.constant 0 : index
    %c0_22 = arith.constant 0 : index
    %c0_23 = arith.constant 0 : index
    %c384 = arith.constant 384 : index
    %16 = vector.load %arg7[%c0_21, %c0_22, %c0_23, %c384] : memref<1x4x16x1152xf32, #tpu.memory_space<vmem>>, vector<1x4x16x128xf32>
    tpu.vector_store %arg7[%c0_21, %c0_22, %c0_23, %c384], %15 {strides = array<i32>} : memref<1x4x16x1152xf32, #tpu.memory_space<vmem>>, vector<1x4x16x128xf32>,
    %c1_i32_24 = arith.constant 1 : i32
    %17 = arith.addi %0, %c1_i32_24 : i32
    %c0_25 = arith.constant 0 : index
    %18 = arith.index_cast %17 : i32 to index
    %c1_26 = arith.constant 1 : index
    %c0_27 = arith.constant 0 : index
    %19 = vector.load %arg2[%c0_25, %18, %c1_26, %c0_27] : memref<1x18x18x128xf32, #tpu.memory_space<vmem>>, vector<1x4x16x128xf32>
    %c0_28 = arith.constant 0 : index
    %c0_29 = arith.constant 0 : index
    %c0_30 = arith.constant 0 : index
    %c512 = arith.constant 512 : index
    %20 = vector.load %arg7[%c0_28, %c0_29, %c0_30, %c512] : memref<1x4x16x1152xf32, #tpu.memory_space<vmem>>, vector<1x4x16x128xf32>
    tpu.vector_store %arg7[%c0_28, %c0_29, %c0_30, %c512], %19 {strides = array<i32>} : memref<1x4x16x1152xf32, #tpu.memory_space<vmem>>, vector<1x4x16x128xf32>,
    %c1_i32_31 = arith.constant 1 : i32
    %21 = arith.addi %0, %c1_i32_31 : i32
    %c0_32 = arith.constant 0 : index
    %22 = arith.index_cast %21 : i32 to index
    %c2_33 = arith.constant 2 : index
    %c0_34 = arith.constant 0 : index
    %23 = vector.load %arg2[%c0_32, %22, %c2_33, %c0_34] : memref<1x18x18x128xf32, #tpu.memory_space<vmem>>, vector<1x4x16x128xf32>
    %c0_35 = arith.constant 0 : index
    %c0_36 = arith.constant 0 : index
    %c0_37 = arith.constant 0 : index
    %c640 = arith.constant 640 : index
    %24 = vector.load %arg7[%c0_35, %c0_36, %c0_37, %c640] : memref<1x4x16x1152xf32, #tpu.memory_space<vmem>>, vector<1x4x16x128xf32>
    tpu.vector_store %arg7[%c0_35, %c0_36, %c0_37, %c640], %23 {strides = array<i32>} : memref<1x4x16x1152xf32, #tpu.memory_space<vmem>>, vector<1x4x16x128xf32>,
    %c2_i32 = arith.constant 2 : i32
    %25 = arith.addi %0, %c2_i32 : i32
    %c0_38 = arith.constant 0 : index
    %26 = arith.index_cast %25 : i32 to index
    %c0_39 = arith.constant 0 : index
    %c0_40 = arith.constant 0 : index
    %27 = vector.load %arg2[%c0_38, %26, %c0_39, %c0_40] : memref<1x18x18x128xf32, #tpu.memory_space<vmem>>, vector<1x4x16x128xf32>
    %c0_41 = arith.constant 0 : index
    %c0_42 = arith.constant 0 : index
    %c0_43 = arith.constant 0 : index
    %c768 = arith.constant 768 : index
    %28 = vector.load %arg7[%c0_41, %c0_42, %c0_43, %c768] : memref<1x4x16x1152xf32, #tpu.memory_space<vmem>>, vector<1x4x16x128xf32>
    tpu.vector_store %arg7[%c0_41, %c0_42, %c0_43, %c768], %27 {strides = array<i32>} : memref<1x4x16x1152xf32, #tpu.memory_space<vmem>>, vector<1x4x16x128xf32>,
    %c2_i32_44 = arith.constant 2 : i32
    %29 = arith.addi %0, %c2_i32_44 : i32
    %c0_45 = arith.constant 0 : index
    %30 = arith.index_cast %29 : i32 to index
    %c1_46 = arith.constant 1 : index
    %c0_47 = arith.constant 0 : index
    %31 = vector.load %arg2[%c0_45, %30, %c1_46, %c0_47] : memref<1x18x18x128xf32, #tpu.memory_space<vmem>>, vector<1x4x16x128xf32>
    %c0_48 = arith.constant 0 : index
    %c0_49 = arith.constant 0 : index
    %c0_50 = arith.constant 0 : index
    %c896 = arith.constant 896 : index
    %32 = vector.load %arg7[%c0_48, %c0_49, %c0_50, %c896] : memref<1x4x16x1152xf32, #tpu.memory_space<vmem>>, vector<1x4x16x128xf32>
    tpu.vector_store %arg7[%c0_48, %c0_49, %c0_50, %c896], %31 {strides = array<i32>} : memref<1x4x16x1152xf32, #tpu.memory_space<vmem>>, vector<1x4x16x128xf32>,
    %c2_i32_51 = arith.constant 2 : i32
    %33 = arith.addi %0, %c2_i32_51 : i32
    %c0_52 = arith.constant 0 : index
    %34 = arith.index_cast %33 : i32 to index
    %c2_53 = arith.constant 2 : index
    %c0_54 = arith.constant 0 : index
    %35 = vector.load %arg2[%c0_52, %34, %c2_53, %c0_54] : memref<1x18x18x128xf32, #tpu.memory_space<vmem>>, vector<1x4x16x128xf32>
    %c0_55 = arith.constant 0 : index
    %c0_56 = arith.constant 0 : index
    %c0_57 = arith.constant 0 : index
    %c1024 = arith.constant 1024 : index
    %36 = vector.load %arg7[%c0_55, %c0_56, %c0_57, %c1024] : memref<1x4x16x1152xf32, #tpu.memory_space<vmem>>, vector<1x4x16x128xf32>
    tpu.vector_store %arg7[%c0_55, %c0_56, %c0_57, %c1024], %35 {strides = array<i32>} : memref<1x4x16x1152xf32, #tpu.memory_space<vmem>>, vector<1x4x16x128xf32>,
    %c0_58 = arith.constant 0 : index
    %c0_59 = arith.constant 0 : index
    %c0_60 = arith.constant 0 : index
    %c0_61 = arith.constant 0 : index
    %37 = vector.load %arg7[%c0_58, %c0_59, %c0_60, %c0_61] : memref<1x4x16x1152xf32, #tpu.memory_space<vmem>>, vector<1x4x16x1152xf32>
    %38 = vector.shape_cast %37 : vector<1x4x16x1152xf32> to vector<64x1152xf32>
    %c0_62 = arith.constant 0 : index
    %c0_63 = arith.constant 0 : index
    %39 = vector.load %arg3[%c0_62, %c0_63] : memref<1152x128xf32, #tpu.memory_space<vmem>>, vector<1152x128xf32>
    %cst = arith.constant dense<0.000000e+00> : vector<64x128xf32>
    %40 = tpu.matmul %38, %39, %cst {dimension_numbers = #tpu.dot_dimension_numbers<[1], [0], [0], [1], [0, 0, 1, 1], [], []>} : vector<64x1152xf32>, vector<1152x128xf32>, vector<64x128xf32> -> vector<64x128xf32>
    %cst_64 = arith.constant dense<0.000000e+00> : vector<128xf32>
    %41 = vector.multi_reduction <add>, %40, %cst_64 [0] : vector<64x128xf32> to vector<128xf32>
    %42 = vector.shape_cast %41 : vector<128xf32> to vector<1x128xf32>
    %43 = vector.shape_cast %42 : vector<1x128xf32> to vector<1x1x1x128xf32>
    %c0_65 = arith.constant 0 : index
    %c0_66 = arith.constant 0 : index
    %c0_67 = arith.constant 0 : index
    %c0_68 = arith.constant 0 : index
    %44 = vector.load %arg5[%c0_65, %c0_66, %c0_67, %c0_68] : memref<1x1x1x128xf32, #tpu.memory_space<vmem>>, vector<1x1x1x128xf32>
    tpu.vector_store %arg5[%c0_65, %c0_66, %c0_67, %c0_68], %43 {strides = array<i32>} : memref<1x1x1x128xf32, #tpu.memory_space<vmem>>, vector<1x1x1x128xf32>,
    %45 = arith.mulf %40, %40 : vector<64x128xf32>
    %cst_69 = arith.constant dense<0.000000e+00> : vector<128xf32>
    %46 = vector.multi_reduction <add>, %45, %cst_69 [0] : vector<64x128xf32> to vector<128xf32>
    %47 = vector.shape_cast %46 : vector<128xf32> to vector<1x128xf32>
    %48 = vector.shape_cast %47 : vector<1x128xf32> to vector<1x1x1x128xf32>
    %c0_70 = arith.constant 0 : index
    %c0_71 = arith.constant 0 : index
    %c0_72 = arith.constant 0 : index
    %c0_73 = arith.constant 0 : index
    %49 = vector.load %arg6[%c0_70, %c0_71, %c0_72, %c0_73] : memref<1x1x1x128xf32, #tpu.memory_space<vmem>>, vector<1x1x1x128xf32>
    tpu.vector_store %arg6[%c0_70, %c0_71, %c0_72, %c0_73], %48 {strides = array<i32>} : memref<1x1x1x128xf32, #tpu.memory_space<vmem>>, vector<1x1x1x128xf32>,
    %50 = vector.shape_cast %40 : vector<64x128xf32> to vector<1x4x16x128xf32>
    %c0_74 = arith.constant 0 : index
    %c0_75 = arith.constant 0 : index
    %c0_76 = arith.constant 0 : index
    %c0_77 = arith.constant 0 : index
    %51 = vector.load %arg4[%c0_74, %c0_75, %c0_76, %c0_77] : memref<1x4x16x128xf32, #tpu.memory_space<vmem>>, vector<1x4x16x128xf32>
    tpu.vector_store %arg4[%c0_74, %c0_75, %c0_76, %c0_77], %50 {strides = array<i32>} : memref<1x4x16x128xf32, #tpu.memory_space<vmem>>, vector<1x4x16x128xf32>,
    return
  }
  func.func @transform_0(%arg0: i32, %arg1: i32) -> (i32, i32, i32, i32) {
    %c0_i32 = arith.constant 0 : i32
    %c0_i32_0 = arith.constant 0 : i32
    %c0_i32_1 = arith.constant 0 : i32
    %c0_i32_2 = arith.constant 0 : i32
    return %arg0, %c0_i32, %c0_i32_0, %c0_i32_1 : i32, i32, i32, i32
  }
  func.func @transform_1(%arg0: i32, %arg1: i32) -> (i32, i32) {
    %c0_i32 = arith.constant 0 : i32
    %c0_i32_0 = arith.constant 0 : i32
    %c0_i32_1 = arith.constant 0 : i32
    return %c0_i32, %c0_i32_0 : i32, i32
  }
  func.func @transform_2(%arg0: i32, %arg1: i32) -> (i32, i32, i32, i32) {
    %c0_i32 = arith.constant 0 : i32
    %c0_i32_0 = arith.constant 0 : i32
    %c0_i32_1 = arith.constant 0 : i32
    return %arg0, %arg1, %c0_i32, %c0_i32_0 : i32, i32, i32, i32
  }
  func.func @transform_3(%arg0: i32, %arg1: i32) -> (i32, i32, i32, i32) {
    %c0_i32 = arith.constant 0 : i32
    %c0_i32_0 = arith.constant 0 : i32
    %c0_i32_1 = arith.constant 0 : i32
    return %arg0, %arg1, %c0_i32, %c0_i32_0 : i32, i32, i32, i32
  }
  func.func @transform_4(%arg0: i32, %arg1: i32) -> (i32, i32, i32, i32) {
    %c0_i32 = arith.constant 0 : i32
    %c0_i32_0 = arith.constant 0 : i32
    %c0_i32_1 = arith.constant 0 : i32
    return %arg0, %arg1, %c0_i32, %c0_i32_0 : i32, i32, i32, i32
  }
}

</mosaic_0001>

<bundles_post_ra>
// kernel: tpu_custom_call.1
= control target key start
LH: loop header
LB: loop body
LE: loop exit
PB: predicated region body
PF: predicated region fallthrough
CT: control target
= control target key end

     0   :  { %10 = vsyncpa [#allocation4], 0  ;;  %s2978_s0 = inlined_call_operand.vmem [shape: f32[2,18,18,128], index: 0, kind: input, shape index: {}]   ;;  %s2979_s1 = inlined_call_operand.vmem [shape: f32[1152,128], index: 1, kind: input, shape index: {}]   ;;  %s2980_s2 = inlined_call_operand.hbm [shape: f32[2,16,16,128], index: 2, kind: output, shape index: {0}]   ;;  %s2981_s3 = inlined_call_operand.hbm [shape: f32[2,4,1,128], index: 3, kind: output, shape index: {1}]   ;;  %s2982_s4 = inlined_call_operand.hbm [shape: f32[2,4,1,128], index: 4, kind: output, shape index: {2}]  }
   0x1   :  { %12 = vsyncpa [#allocation4 + $0x1], 0 }
   0x2   :  { %13 = vsyncpa [#allocation6], 0 }
   0x3   :  { %15 = vsyncpa [#allocation6 + $0x1], 0  ;;  %s2178_s15 = smov 0   ;;  %s2180_s16 = smov 0  }
   0x4   :  { %s2182_s17 = smov 0   ;;  %s2184_s18 = smov 0  }
   0x5   :  { %s2186_s19 = smov 0   ;;  %s2188_s20 = smov 0  }
   0x6   :  { %s2190_s21 = smov 0   ;;  %s2192_s22 = smov 0  }
   0x7 LB: > { %s2984_s23 = sadd.s32 4294967295, %s2146_s22   ;;  %s2983_s24 = sadd.s32 4294967294, %s2146_s22   ;;  %s2146_s22 = sphi %s2192_s22, %s21_s22   ;;  %s2142_s21 = sphi %s2190_s21, %s2997_s21   ;;  %s2138_s20 = sphi %s2188_s20, %s2996_s20   ;;  %s2134_s19 = sphi %s2186_s19, %s2995_s19   ;;  %s2130_s18 = sphi %s2184_s18, %s2994_s18   ;;  %s2126_s17 = sphi %s2182_s17, %s2993_s17   ;;  %s2122_s16 = sphi %s2180_s16, %s2992_s16   ;;  %s2118_s15 = sphi %s2178_s15, %s2991_s15  }
   0x8   : > { %s30_s25 = sadd.s32 1, %s2138_s20  ;;  %s33_s26 = sadd.s32 1, %s2142_s21 }
   0x9   : > { %p31_p0 = scmp.ge.s32.totalorder %s30_s25, 4  ;;  %p99_p1 = scmp.ne.s32.totalorder %s2126_s17, %s2122_s16 }
   0xa   : > { %p100_p2 = scmp.eq.s32.totalorder %s2984_s23, 7  ;;  %p105_p5 = scmp.ne.s32.totalorder %s2122_s16, %s2118_s15 }
   0xb   : > { %s2999_s25 = smov (%p31_p0, %s30_s25), 0  ;;  %s3001_s26 = smov (!%p31_p0, %s33_s26), %s2142_s21 }
   0xc   : > { %s85_s27 = ssub.s32 %s2138_s20, %s2999_s25  ;;  %p2231_p3 = por %p100_p2, %p99_p1 }
   0xd   : > { %p35_p4 = scmp.ge.s32.totalorder %s3001_s26, 2  ;;  %p106_p6 = scmp.eq.s32.totalorder %s2983_s24, 7 }
   0xe   : > { %p1371_p7 = scmp.ge.s32.totalorder %s2146_s22, 1  ;;  %p191_p9 = scmp.lt.s32.totalorder %s2146_s22, 9 }
   0xf   : > { %s3003_s26 = smov (%p35_p4, %s3001_s26), 0  ;;  %p2242_p8 = por %p106_p6, %p105_p5 }
  0x10   : > { %s84_s30 = ssub.s32 %s2142_s21, %s3003_s26  ;;  %s89_s5 = sadd.s32 1, %s2126_s17 }
  0x11   : > { %s86_s6 = sor.u32 %s85_s27, %s84_s30  ;;  %p192_p10 = pnand %p1371_p7, %p191_p9 }
  0x12   : > { %p87_p11 = scmp.eq.s32.totalorder %s86_s6, 0  ;;  %v472_v0 = vld [vmem:[%s2979_s1 + $0x80] sm:$0xff] (!%p192_p10)  ;;  %v473_v1 = vld [vmem:[%s2979_s1 + $0x88] sm:$0xff] (!%p192_p10)  ;;  %v474_v11 = vld [vmem:[%s2979_s1 + $0x90] sm:$0xff] (!%p192_p10)  ;;  %p225_p12 = scmp.lt.s32.totalorder (!%p192_p10), %s2134_s19, 1 }
  0x13   : > { %195 = sbr.rel (%p192_p10) target bundleno = 410 (0x19a), region = 28  ;;  %v504_v2 = vld [vmem:[%s2979_s1 + $0x180] sm:$0xff] (!%p192_p10)  ;;  %v1732_v3 = vpack.c.bf16 (!%p192_p10), %v473_v1, %v472_v0  ;;  %v505_v4 = vld [vmem:[%s2979_s1 + $0x188] sm:$0xff] (!%p192_p10)  ;;  %v475_v13 = vld [vmem:[%s2979_s1 + $0x98] sm:$0xff] (!%p192_p10)  ;;  %s1431_s23 = sshll.u32 (!%p192_p10), %s2134_s19, 5 }
  0x14   : > { %s2251_s7 = scalar_select %p87_p11, %s2126_s17, %s89_s5  }
  0x15   : > { %v456_v5 = vld [vmem:[%s2979_s1] sm:$0xff] (!%p192_p10)  ;;  %v457_v6 = vld [vmem:[%s2979_s1 + $0x8] sm:$0xff] (!%p192_p10)  ;;  %v1764_v7 = vpack.c.bf16 (!%p192_p10), %v505_v4, %v504_v2  ;;  %1733 = vmatprep.subr.bf16.mxu0 (!%p192_p10), %v1732_v3  ;;  %v506_v14 = vld [vmem:[%s2979_s1 + $0x190] sm:$0xff] (!%p192_p10)  ;;  %v1736_v16 = vpack.c.bf16 (!%p192_p10), %v475_v13, %v474_v11  ;;  %s1375_s30 = smul.u32 (!%p192_p10), 96, %s2130_s18 }
  0x16   : > { %v1734_v8 = vpack.c.bf16 (!%p192_p10), %v457_v6, %v456_v5  ;;  %v488_v9 = vld [vmem:[%s2979_s1 + $0x100] sm:$0xff] (!%p192_p10)  ;;  %v489_v10 = vld [vmem:[%s2979_s1 + $0x108] sm:$0xff] (!%p192_p10)  ;;  %v507_v15 = vld [vmem:[%s2979_s1 + $0x198] sm:$0xff] (!%p192_p10) }
  0x17   : > { %v1766_v12 = vpack.c.bf16 (!%p192_p10), %v489_v10, %v488_v9  ;;  %1765 = vmatprep.subr.bf16.mxu1 (!%p192_p10), %v1764_v7  ;;  %v1768_v17 = vpack.c.bf16 (!%p192_p10), %v507_v15, %v506_v14  ;;  %v458_v18 = vld [vmem:[%s2979_s1 + $0x10] sm:$0xff] (!%p192_p10)  ;;  %v459_v19 = vld [vmem:[%s2979_s1 + $0x18] sm:$0xff] (!%p192_p10)  ;;  %v476_v23 = vld [vmem:[%s2979_s1 + $0xa0] sm:$0xff] (!%p192_p10) }
  0x18   : > { %1735 = vmatpush3.bf16.msra.mxu0 (!%p192_p10), %v1734_v8  ;;  %v490_v20 = vld [vmem:[%s2979_s1 + $0x110] sm:$0xff] (!%p192_p10)  ;;  %v1738_v21 = vpack.c.bf16 (!%p192_p10), %v459_v19, %v458_v18  ;;  %v491_v22 = vld [vmem:[%s2979_s1 + $0x118] sm:$0xff] (!%p192_p10)  ;;  %v477_v24 = vld [vmem:[%s2979_s1 + $0xa8] sm:$0xff] (!%p192_p10) }
  0x19   : > { %1767 = vmatpush3.bf16.msra.mxu1 (!%p192_p10), %v1766_v12  ;;  %1737 = vmatprep.subr.bf16.mxu0 (!%p192_p10), %v1736_v16  ;;  %v1770_v25 = vpack.c.bf16 (!%p192_p10), %v491_v22, %v490_v20  ;;  %v1740_v26 = vpack.c.bf16 (!%p192_p10), %v477_v24, %v476_v23  ;;  %v508_v27 = vld [vmem:[%s2979_s1 + $0x1a0] sm:$0xff] (!%p192_p10)  ;;  %v509_v28 = vld [vmem:[%s2979_s1 + $0x1a8] sm:$0xff] (!%p192_p10)  ;;  %v478_v35 = vld [vmem:[%s2979_s1 + $0xb0] sm:$0xff] (!%p192_p10) }
  0x1a   : > { %1769 = vmatprep.subr.bf16.mxu1 %v1768_v17  ;;  %v460_v29 = vld [vmem:[%s2979_s1 + $0x20] sm:$0xff]  ;;  %v1772_v30 = vpack.c.bf16 %v509_v28, %v508_v27  ;;  %v461_v31 = vld [vmem:[%s2979_s1 + $0x28] sm:$0xff]  ;;  %s2329_s12 = scalar_select %p225_p12, %s2134_s19, 1  ;;  %v479_v36 = vld [vmem:[%s2979_s1 + $0xb8] sm:$0xff] }
  0x1b   : > { %v492_v32 = vld [vmem:[%s2979_s1 + $0x120] sm:$0xff]  ;;  %v493_v33 = vld [vmem:[%s2979_s1 + $0x128] sm:$0xff]  ;;  %v1742_v34 = vpack.c.bf16 %v461_v31, %v460_v29  ;;  %v510_v37 = vld [vmem:[%s2979_s1 + $0x1b0] sm:$0xff]  ;;  %v1744_v39 = vpack.c.bf16 %v479_v36, %v478_v35 }
  0x1c   : > { %1739 = vmatpush3.bf16.msra.mxu0 %v1738_v21  ;;  %v1774_v38 = vpack.c.bf16 %v493_v33, %v492_v32  ;;  %v511_v40 = vld [vmem:[%s2979_s1 + $0x1b8] sm:$0xff]  ;;  %v462_v41 = vld [vmem:[%s2979_s1 + $0x30] sm:$0xff]  ;;  %v480_v46 = vld [vmem:[%s2979_s1 + $0xc0] sm:$0xff]  ;;  %s1908_s27 = smul.u32 432, %s2329_s12 }
  0x1d   : > { %1771 = vmatpush3.bf16.msra.mxu1 %v1770_v25  ;;  %1741 = vmatprep.subr.bf16.mxu0 %v1740_v26  ;;  %v463_v42 = vld [vmem:[%s2979_s1 + $0x38] sm:$0xff]  ;;  %v1776_v43 = vpack.c.bf16 %v511_v40, %v510_v37  ;;  %v494_v44 = vld [vmem:[%s2979_s1 + $0x130] sm:$0xff]  ;;  %v481_v47 = vld [vmem:[%s2979_s1 + $0xc8] sm:$0xff] }
  0x1e   : > { %1773 = vmatprep.subr.bf16.mxu1 %v1772_v30  ;;  %v495_v45 = vld [vmem:[%s2979_s1 + $0x138] sm:$0xff]  ;;  %v512_v48 = vld [vmem:[%s2979_s1 + $0x1c0] sm:$0xff]  ;;  %v513_v49 = vld [vmem:[%s2979_s1 + $0x1c8] sm:$0xff]  ;;  %v1746_v50 = vpack.c.bf16 %v463_v42, %v462_v41  ;;  %v1748_v52 = vpack.c.bf16 %v481_v47, %v480_v46  ;;  %s229_s24 = scalar_lea.vmem %s2978_s0, %s1908_s27 }
  0x1f   : > { %v1778_v51 = vpack.c.bf16 %v495_v45, %v494_v44  ;;  %v464_v53 = vld [vmem:[%s2979_s1 + $0x40] sm:$0xff]  ;;  %v465_v54 = vld [vmem:[%s2979_s1 + $0x48] sm:$0xff]  ;;  %v1780_v56 = vpack.c.bf16 %v513_v49, %v512_v48  ;;  %v482_v58 = vld [vmem:[%s2979_s1 + $0xd0] sm:$0xff]  ;;  %s2414_s11 = scalar_lea.vmem %s229_s24, %s1375_s30  ;;  %s1439_s24 = sshll.u32 %s2130_s18, 3 }
  0x20   : > { %1743 = vmatpush3.bf16.msra.mxu0 %v1742_v34  ;;  %v496_v55 = vld [vmem:[%s2979_s1 + $0x140] sm:$0xff]  ;;  %v497_v57 = vld [vmem:[%s2979_s1 + $0x148] sm:$0xff]  ;;  %v483_v59 = vld [vmem:[%s2979_s1 + $0xd8] sm:$0xff]  ;;  %v1750_v62 = vpack.c.bf16 %v465_v54, %v464_v53  ;;  %s1191_s12 = sadd.s32 %s1439_s24, %s1431_s23 }
  0x21   : > { %1775 = vmatpush3.bf16.msra.mxu1 %v1774_v38  ;;  %1745 = vmatprep.subr.bf16.mxu0 %v1744_v39  ;;  %v514_v60 = vld [vmem:[%s2979_s1 + $0x1d0] sm:$0xff]  ;;  %v515_v61 = vld [vmem:[%s2979_s1 + $0x1d8] sm:$0xff]  ;;  %v1782_v63 = vpack.c.bf16 %v497_v57, %v496_v55  ;;  %v1752_v0 = vpack.c.bf16 %v483_v59, %v482_v58  ;;  %v484_v6 = vld [vmem:[%s2979_s1 + $0xe0] sm:$0xff]  ;;  %s1432_s14 = sshll.u32 %s1191_s12, 7 }
  0x22   : > { %1777 = vmatprep.subr.bf16.mxu1 %v1776_v43  ;;  %v466_v1 = vld [vmem:[%s2979_s1 + $0x50] sm:$0xff]  ;;  %v467_v2 = vld [vmem:[%s2979_s1 + $0x58] sm:$0xff]  ;;  %v1784_v4 = vpack.c.bf16 %v515_v61, %v514_v60  ;;  %v485_v7 = vld [vmem:[%s2979_s1 + $0xe8] sm:$0xff]  ;;  %s2844_s8 = scalar_lea.hbm %s2980_s2, %s1432_s14 }
  0x23   : > { %v498_v3 = vld [vmem:[%s2979_s1 + $0x150] sm:$0xff]  ;;  %v499_v5 = vld [vmem:[%s2979_s1 + $0x158] sm:$0xff]  ;;  %v516_v8 = vld [vmem:[%s2979_s1 + $0x1e0] sm:$0xff]  ;;  %v1754_v10 = vpack.c.bf16 %v467_v2, %v466_v1  ;;  %v1756_v14 = vpack.c.bf16 %v485_v7, %v484_v6 }
  0x24   : > { %1747 = vmatpush3.bf16.msra.mxu0 %v1746_v50  ;;  %v517_v9 = vld [vmem:[%s2979_s1 + $0x1e8] sm:$0xff]  ;;  %v468_v11 = vld [vmem:[%s2979_s1 + $0x60] sm:$0xff]  ;;  %v1786_v13 = vpack.c.bf16 %v499_v5, %v498_v3  ;;  %v2433_v17 = vld [vmem:[%s2414_s11 + $0x18] sm:$0xff] }
  0x25   : > { %1779 = vmatpush3.bf16.msra.mxu1 %v1778_v51  ;;  %1749 = vmatprep.subr.bf16.mxu0 %v1748_v52  ;;  %v469_v12 = vld [vmem:[%s2979_s1 + $0x68] sm:$0xff]  ;;  %v500_v15 = vld [vmem:[%s2979_s1 + $0x160] sm:$0xff]  ;;  %v1788_v18 = vpack.c.bf16 %v517_v9, %v516_v8  ;;  %v486_v20 = vld [vmem:[%s2979_s1 + $0xf0] sm:$0xff] }
  0x26   : > { %1781 = vmatprep.subr.bf16.mxu1 %v1780_v56  ;;  %v250_v16 = vld [vmem:[%s2414_s11 + $0x1] sm:$0xff]  ;;  %v487_v21 = vld [vmem:[%s2979_s1 + $0xf8] sm:$0xff]  ;;  %v518_v22 = vld [vmem:[%s2979_s1 + $0x1f0] sm:$0xff]  ;;  %769 = vmatprep.mubr.f32.mxu1 %v2433_v17  ;;  %v1758_v24 = vpack.c.bf16 %v469_v12, %v468_v11 }
  0x27   : > { %v501_v19 = vld [vmem:[%s2979_s1 + $0x168] sm:$0xff]  ;;  %664 = vmatprep.mubr.f32.mxu0 %v250_v16  ;;  %v519_v23 = vld [vmem:[%s2979_s1 + $0x1f8] sm:$0xff]  ;;  %v1760_v26 = vpack.c.bf16 %v487_v21, %v486_v20  ;;  %v470_v27 = vld [vmem:[%s2979_s1 + $0x70] sm:$0xff] }
  0x28   : > { %1751 = vmatpush3.bf16.msra.mxu0 %v1750_v62  ;;  %v1790_v25 = vpack.c.bf16 %v501_v19, %v500_v15  ;;  %v471_v28 = vld [vmem:[%s2979_s1 + $0x78] sm:$0xff]  ;;  %v502_v29 = vld [vmem:[%s2979_s1 + $0x170] sm:$0xff]  ;;  %v1792_v30 = vpack.c.bf16 %v519_v23, %v518_v22  ;;  %v536_v32 = vld [vmem:[%s2979_s1 + $0x280] sm:$0xff] }
  0x29   : > { %1783 = vmatpush3.bf16.msra.mxu1 %v1782_v63  ;;  %1753 = vmatprep.subr.bf16.mxu0 %v1752_v0  ;;  %v503_v31 = vld [vmem:[%s2979_s1 + $0x178] sm:$0xff]  ;;  %v537_v33 = vld [vmem:[%s2979_s1 + $0x288] sm:$0xff]  ;;  %v568_v34 = vld [vmem:[%s2979_s1 + $0x380] sm:$0xff]  ;;  %v1762_v36 = vpack.c.bf16 %v471_v28, %v470_v27 }
  0x2a   : > { %1785 = vmatprep.subr.bf16.mxu1 %v1784_v4  ;;  %v569_v35 = vld [vmem:[%s2979_s1 + $0x388] sm:$0xff]  ;;  %v1794_v37 = vpack.c.bf16 %v503_v31, %v502_v29  ;;  %v1796_v38 = vpack.c.bf16 %v537_v33, %v536_v32  ;;  %v520_v39 = vld [vmem:[%s2979_s1 + $0x200] sm:$0xff]  ;;  %v538_v44 = vld [vmem:[%s2979_s1 + $0x290] sm:$0xff] }
  0x2b   : > { %v521_v40 = vld [vmem:[%s2979_s1 + $0x208] sm:$0xff]  ;;  %v1828_v41 = vpack.c.bf16 %v569_v35, %v568_v34  ;;  %v552_v42 = vld [vmem:[%s2979_s1 + $0x300] sm:$0xff]  ;;  %v539_v45 = vld [vmem:[%s2979_s1 + $0x298] sm:$0xff] }
  0x2c   : > { %1755 = vmatpush3.bf16.msra.mxu0 %v1754_v10  ;;  %v553_v43 = vld [vmem:[%s2979_s1 + $0x308] sm:$0xff]  ;;  %v234_v46 = vld [vmem:[%s2414_s11] sm:$0xff]  ;;  %v1798_v47 = vpack.c.bf16 %v521_v40, %v520_v39  ;;  %v570_v48 = vld [vmem:[%s2979_s1 + $0x390] sm:$0xff]  ;;  %v1800_v55 = vpack.c.bf16 %v539_v45, %v538_v44 }
  0x2d   : > { %1787 = vmatpush3.bf16.msra.mxu1 %v1786_v13  ;;  %1757 = vmatprep.subr.bf16.mxu0 %v1756_v14  ;;  %v571_v49 = vld [vmem:[%s2979_s1 + $0x398] sm:$0xff]  ;;  %v266_v50 = vld [vmem:[%s2414_s11 + $0x2] sm:$0xff]  ;;  %v1830_v51 = vpack.c.bf16 %v553_v43, %v552_v42  ;;  %v522_v52 = vld [vmem:[%s2979_s1 + $0x210] sm:$0xff] }
  0x2e   : > { %1789 = vmatprep.subr.bf16.mxu1 %v1788_v18  ;;  %v523_v53 = vld [vmem:[%s2979_s1 + $0x218] sm:$0xff]  ;;  %v251_v54 = vld [vmem:[%s2414_s11 + $0x9] sm:$0xff]  ;;  %v2515_v58 = vld [vmem:[%s2414_s11 + $0x20] sm:$0xff]  ;;  %v1832_v59 = vpack.c.bf16 %v571_v49, %v570_v48 }
  0x2f   : > { %v554_v56 = vld [vmem:[%s2979_s1 + $0x310] sm:$0xff]  ;;  %v555_v57 = vld [vmem:[%s2979_s1 + $0x318] sm:$0xff]  ;;  %v540_v60 = vld [vmem:[%s2979_s1 + $0x2a0] sm:$0xff]  ;;  %v1802_v63 = vpack.c.bf16 %v523_v53, %v522_v52 }
  0x30   : > { %1759 = vmatpush3.bf16.msra.mxu0 %v1758_v24  ;;  %v541_v61 = vld [vmem:[%s2979_s1 + $0x2a8] sm:$0xff]  ;;  %v572_v0 = vld [vmem:[%s2979_s1 + $0x3a0] sm:$0xff]  ;;  %v1834_v3 = vpack.c.bf16 %v555_v57, %v554_v56  ;;  %v2548_v10 = vld [vmem:[%s2414_s11 + $0x30] sm:$0xff] }
  0x31   : > { %1791 = vmatpush3.bf16.msra.mxu1 %v1790_v25  ;;  %1761 = vmatprep.subr.bf16.mxu0 %v1760_v26  ;;  %v235_v62 = vld [vmem:[%s2414_s11 + $0x8] sm:$0xff]  ;;  %v524_v4 = vld [vmem:[%s2979_s1 + $0x220] sm:$0xff]  ;;  %v1804_v7 = vpack.c.bf16 %v541_v61, %v540_v60  ;;  %v542_v12 = vld [vmem:[%s2979_s1 + $0x2b0] sm:$0xff] }
  0x32   : > { %1793 = vmatprep.subr.bf16.mxu1 %v1792_v30  ;;  %v573_v1 = vld [vmem:[%s2979_s1 + $0x3a8] sm:$0xff]  ;;  %v2539_v6 = vld [vmem:[%s2414_s11 + $0x19] sm:$0xff]  ;;  %v574_v15 = vld [vmem:[%s2979_s1 + $0x3b0] sm:$0xff] }
  0x33   : > { %v267_v2 = vld [vmem:[%s2414_s11 + $0xa] sm:$0xff]  ;;  %v556_v8 = vld [vmem:[%s2979_s1 + $0x320] sm:$0xff]  ;;  %v1836_v11 = vpack.c.bf16 %v573_v1, %v572_v0  ;;  %v543_v13 = vld [vmem:[%s2979_s1 + $0x2b8] sm:$0xff] }
  0x34   : > { %1763 = vmatpush3.bf16.msra.mxu0 %v1762_v36  ;;  %v525_v5 = vld [vmem:[%s2979_s1 + $0x228] sm:$0xff]  ;;  %v575_v16 = vld [vmem:[%s2979_s1 + $0x3b8] sm:$0xff]  ;;  %v526_v20 = vld [vmem:[%s2979_s1 + $0x230] sm:$0xff]  ;;  %v1808_v23 = vpack.c.bf16 %v543_v13, %v542_v12 }
  0x35   : > { %1795 = vmatpush3.bf16.msra.mxu1 %v1794_v37  ;;  %1797 = vmatprep.subr.bf16.mxu0 %v1796_v38  ;;  %v557_v9 = vld [vmem:[%s2979_s1 + $0x328] sm:$0xff]  ;;  %v1806_v14 = vpack.c.bf16 %v525_v5, %v524_v4  ;;  %v2564_v18 = vld [vmem:[%s2414_s11 + $0x1a] sm:$0xff]  ;;  %v558_v24 = vld [vmem:[%s2979_s1 + $0x330] sm:$0xff]  ;;  %v1840_v27 = vpack.c.bf16 %v575_v16, %v574_v15 }
  0x36   : > { %1829 = vmatprep.subr.bf16.mxu1 %v1828_v41  ;;  %v1838_v19 = vpack.c.bf16 %v557_v9, %v556_v8  ;;  %v527_v21 = vld [vmem:[%s2979_s1 + $0x238] sm:$0xff]  ;;  %v2574_v22 = vld [vmem:[%s2414_s11 + $0x21] sm:$0xff]  ;;  %v546_v42 = vld [vmem:[%s2979_s1 + $0x2d0] sm:$0xff] }
  0x37   : > { %665 = vmatmul.mubr.f32.vlgmr.msra.gmra.mrb[0].mxu0 %v234_v46  ;;  %v559_v25 = vld [vmem:[%s2979_s1 + $0x338] sm:$0xff]  ;;  %v544_v28 = vld [vmem:[%s2979_s1 + $0x2c0] sm:$0xff]  ;;  %v545_v29 = vld [vmem:[%s2979_s1 + $0x2c8] sm:$0xff]  ;;  %v1810_v30 = vpack.c.bf16 %v527_v21, %v526_v20 }
  0x38   : > { %770 = vmatmul.mubr.f32.vlgmr.msra.gmra.mrb[0].mxu1 %v266_v50  ;;  %1799 = vmatpush3.bf16.msra.mxu0 %v1798_v47  ;;  %v2584_v26 = vld [vmem:[%s2414_s11 + $0x38] sm:$0xff]  ;;  %v577_v31 = vld [vmem:[%s2979_s1 + $0x3c8] sm:$0xff]  ;;  %v1842_v33 = vpack.c.bf16 %v559_v25, %v558_v24  ;;  %v528_v34 = vld [vmem:[%s2979_s1 + $0x240] sm:$0xff]  ;;  %v1812_v37 = vpack.c.bf16 %v545_v29, %v544_v28 }
  0x39   : > { %1831 = vmatpush3.bf16.msra.mxu1 %v1830_v51  ;;  %669 = vmatprep.mubr.f32.mxu0 %v251_v54  ;;  %v2601_v32 = vld [vmem:[%s2414_s11 + $0x22] sm:$0xff]  ;;  %v2611_v36 = vld [vmem:[%s2414_s11 + $0x31] sm:$0xff]  ;;  %v2648_v51 = vld [vmem:[%s2414_s11 + $0x39] sm:$0xff] }
  0x3a   : > { %774 = vmatprep.mubr.f32.mxu1 %v2515_v58  ;;  %1801 = vmatprep.subr.bf16.mxu0 %v1800_v55  ;;  %v529_v35 = vld [vmem:[%s2979_s1 + $0x248] sm:$0xff]  ;;  %v560_v38 = vld [vmem:[%s2979_s1 + $0x340] sm:$0xff]  ;;  %v547_v43 = vld [vmem:[%s2979_s1 + $0x2d8] sm:$0xff] }
  0x3b   : > { %670 = vmatmul.mubr.f32.gmra.mrb[2].mxu0 %v235_v62  ;;  %1833 = vmatprep.subr.bf16.mxu1 %v1832_v59  ;;  %v561_v39 = vld [vmem:[%s2979_s1 + $0x348] sm:$0xff]  ;;  %v1814_v44 = vpack.c.bf16 %v529_v35, %v528_v34  ;;  %v578_v45 = vld [vmem:[%s2979_s1 + $0x3d0] sm:$0xff]  ;;  %v579_v46 = vld [vmem:[%s2979_s1 + $0x3d8] sm:$0xff]  ;;  %v1816_v52 = vpack.c.bf16 %v547_v43, %v546_v42 }
  0x3c   : > { %775 = vmatmul.mubr.f32.gmra.mrb[2].mxu1 %v267_v2  ;;  %1803 = vmatpush3.bf16.msra.mxu0 %v1802_v63  ;;  %v2621_v40 = vld [vmem:[%s2414_s11 + $0x48] sm:$0xff]  ;;  %v2638_v47 = vld [vmem:[%s2414_s11 + $0x32] sm:$0xff]  ;;  %v1846_v48 = vpack.c.bf16 %v561_v39, %v560_v38  ;;  %v1848_v56 = vpack.c.bf16 %v579_v46, %v578_v45  ;;  %v548_v57 = vld [vmem:[%s2979_s1 + $0x2e0] sm:$0xff] }
  0x3d   : > { %1835 = vmatpush3.bf16.msra.mxu1 %v1834_v3  ;;  %674 = vmatprep.mubr.f32.mxu0 %v2539_v6  ;;  %v530_v49 = vld [vmem:[%s2979_s1 + $0x250] sm:$0xff]  ;;  %v531_v50 = vld [vmem:[%s2979_s1 + $0x258] sm:$0xff]  ;;  %v580_v60 = vld [vmem:[%s2979_s1 + $0x3e0] sm:$0xff] }
  0x3e   : > { %779 = vmatprep.mubr.f32.mxu1 %v2548_v10  ;;  %1805 = vmatprep.subr.bf16.mxu0 %v1804_v7  ;;  %v562_v53 = vld [vmem:[%s2979_s1 + $0x350] sm:$0xff]  ;;  %v563_v54 = vld [vmem:[%s2979_s1 + $0x358] sm:$0xff]  ;;  %v1818_v59 = vpack.c.bf16 %v531_v50, %v530_v49  ;;  %v581_v61 = vld [vmem:[%s2979_s1 + $0x3e8] sm:$0xff] }
  0x3f   : > { %675 = vmatmul.mubr.f32.gmra.mrb[4].mxu0 %v2433_v17  ;;  %1837 = vmatprep.subr.bf16.mxu1 %v1836_v11  ;;  %v576_v17 = vld [vmem:[%s2979_s1 + $0x3c0] sm:$0xff]  ;;  %v2658_v55 = vld [vmem:[%s2414_s11 + $0x50] sm:$0xff]  ;;  %v1850_v63 = vpack.c.bf16 %v563_v54, %v562_v53  ;;  %v533_v1 = vld [vmem:[%s2979_s1 + $0x268] sm:$0xff]  ;;  %v1852_v8 = vpack.c.bf16 %v581_v61, %v580_v60 }
  0x40   : > { %780 = vmatmul.mubr.f32.gmra.mrb[4].mxu1 %v2564_v18  ;;  %1807 = vmatpush3.bf16.msra.mxu0 %v1806_v14  ;;  %v1844_v41 = vpack.c.bf16 %v577_v31, %v576_v17  ;;  %v2675_v62 = vld [vmem:[%s2414_s11 + $0x3a] sm:$0xff]  ;;  %v2685_v2 = vld [vmem:[%s2414_s11 + $0x49] sm:$0xff]  ;;  %v2722_v21 = vld [vmem:[%s2414_s11 + $0x51] sm:$0xff] }
  0x41   : > { %1839 = vmatpush3.bf16.msra.mxu1 %v1838_v19  ;;  %679 = vmatprep.mubr.f32.mxu0 %v2574_v22  ;;  %v532_v0 = vld [vmem:[%s2979_s1 + $0x260] sm:$0xff]  ;;  %v565_v5 = vld [vmem:[%s2979_s1 + $0x368] sm:$0xff]  ;;  %v550_v9 = vld [vmem:[%s2979_s1 + $0x2f0] sm:$0xff] }
  0x42   : > { %784 = vmatprep.mubr.f32.mxu1 %v2584_v26  ;;  %1809 = vmatprep.subr.bf16.mxu0 %v1808_v23  ;;  %v564_v4 = vld [vmem:[%s2979_s1 + $0x360] sm:$0xff]  ;;  %v551_v11 = vld [vmem:[%s2979_s1 + $0x2f8] sm:$0xff]  ;;  %v1822_v12 = vpack.c.bf16 %v533_v1, %v532_v0  ;;  %v582_v13 = vld [vmem:[%s2979_s1 + $0x3f0] sm:$0xff] }
  0x43   : > { %680 = vmatmul.mubr.f32.gmra.mrb[6].mxu0 %v2515_v58  ;;  %1841 = vmatprep.subr.bf16.mxu1 %v1840_v27  ;;  %v549_v58 = vld [vmem:[%s2979_s1 + $0x2e8] sm:$0xff]  ;;  %v2695_v7 = vld [vmem:[%s2414_s11 + $0x60] sm:$0xff]  ;;  %v583_v14 = vld [vmem:[%s2979_s1 + $0x3f8] sm:$0xff]  ;;  %v1854_v16 = vpack.c.bf16 %v565_v5, %v564_v4  ;;  %v1824_v23 = vpack.c.bf16 %v551_v11, %v550_v9 }
  0x44   : > { %785 = vmatmul.mubr.f32.gmra.mrb[6].mxu1 %v2601_v32  ;;  %1811 = vmatpush3.bf16.msra.mxu0 %v1810_v30  ;;  %v1820_v3 = vpack.c.bf16 %v549_v58, %v548_v57  ;;  %v2712_v15 = vld [vmem:[%s2414_s11 + $0x4a] sm:$0xff]  ;;  %v535_v20 = vld [vmem:[%s2979_s1 + $0x278] sm:$0xff]  ;;  %v1856_v28 = vpack.c.bf16 %v583_v14, %v582_v13  ;;  %v584_v29 = vld [vmem:[%s2979_s1 + $0x400] sm:$0xff] }
  0x45   : > { %1843 = vmatpush3.bf16.msra.mxu1 %v1842_v33  ;;  %684 = vmatprep.mubr.f32.mxu0 %v2611_v36  ;;  %v534_v19 = vld [vmem:[%s2979_s1 + $0x270] sm:$0xff]  ;;  %v567_v25 = vld [vmem:[%s2979_s1 + $0x378] sm:$0xff]  ;;  %v2732_v27 = vld [vmem:[%s2414_s11 + $0x68] sm:$0xff] }
  0x46   : > { %789 = vmatprep.mubr.f32.mxu1 %v2621_v40  ;;  %1813 = vmatprep.subr.bf16.mxu0 %v1812_v37  ;;  %v566_v24 = vld [vmem:[%s2979_s1 + $0x370] sm:$0xff]  ;;  %v585_v30 = vld [vmem:[%s2979_s1 + $0x408] sm:$0xff]  ;;  %v1826_v17 = vpack.c.bf16 %v535_v20, %v534_v19  ;;  %v587_v37 = vld [vmem:[%s2979_s1 + $0x418] sm:$0xff] }
  0x47   : > { %685 = vmatmul.mubr.f32.gmra.mrb[8].mxu0 %v2548_v10  ;;  %1845 = vmatprep.subr.bf16.mxu1 %v1844_v41  ;;  %v2743_v31 = vld [vmem:[%s2414_s11 + $0x52] sm:$0xff]  ;;  %v1858_v33 = vpack.c.bf16 %v567_v25, %v566_v24  ;;  %v1860_v34 = vpack.c.bf16 %v585_v30, %v584_v29  ;;  %v588_v39 = vld [vmem:[%s2979_s1 + $0x420] sm:$0xff]  ;;  %v589_v41 = vld [vmem:[%s2979_s1 + $0x428] sm:$0xff] }
  0x48   : > { %790 = vmatmul.mubr.f32.gmra.mrb[8].mxu1 %v2638_v47  ;;  %1815 = vmatpush3.bf16.msra.mxu0 %v1814_v44  ;;  %v586_v35 = vld [vmem:[%s2979_s1 + $0x410] sm:$0xff]  ;;  %v591_v42 = vld [vmem:[%s2979_s1 + $0x438] sm:$0xff]  ;;  %v596_v46 = vld [vmem:[%s2979_s1 + $0x460] sm:$0xff] }
  0x49   : > { %1847 = vmatpush3.bf16.msra.mxu1 %v1846_v48  ;;  %689 = vmatprep.mubr.f32.mxu0 %v2648_v51  ;;  %v1864_v38 = vpack.c.bf16 %v587_v37, %v586_v35  ;;  %v594_v43 = vld [vmem:[%s2979_s1 + $0x450] sm:$0xff]  ;;  %v597_v48 = vld [vmem:[%s2979_s1 + $0x468] sm:$0xff]  ;;  %v599_v53 = vld [vmem:[%s2979_s1 + $0x478] sm:$0xff] }
  0x4a   : > { %794 = vmatprep.mubr.f32.mxu1 %v2658_v55  ;;  %1817 = vmatprep.subr.bf16.mxu0 %v1816_v52  ;;  %v1417_v45 = vld [vmem:[%s2414_s11 + $0x69] sm:$0xff]  ;;  %v1884_v50 = vpack.c.bf16 %v597_v48, %v596_v46  ;;  %v1410_v54 = vld [vmem:[%s2414_s11 + $0x78] sm:$0xff]  ;;  %v1419_v57 = vld [vmem:[%s2414_s11 + $0x81] sm:$0xff] }
  0x4b   : > { %690 = vmatmul.mubr.f32.gmra.mrb[10].mxu0 %v2584_v26  ;;  %1849 = vmatprep.subr.bf16.mxu1 %v1848_v56  ;;  %v1400_v49 = vld [vmem:[%s2414_s11 + $0x62] sm:$0xff]  ;;  %v598_v52 = vld [vmem:[%s2979_s1 + $0x470] sm:$0xff] }
  0x4c   : > { %795 = vmatmul.mubr.f32.gmra.mrb[10].mxu1 %v2675_v62  ;;  %1819 = vmatpush3.bf16.msra.mxu0 %v1818_v59  ;;  %v1888_v56 = vpack.c.bf16 %v599_v53, %v598_v52  ;;  %v1411_v58 = vld [vmem:[%s2414_s11 + $0x80] sm:$0xff] }
  0x4d   : > { %1851 = vmatpush3.bf16.msra.mxu1 %v1850_v63  ;;  %694 = vmatprep.mubr.f32.mxu0 %v2685_v2  ;;  %v1426_v59 = vld [vmem:[%s2414_s11 + $0x7a] sm:$0xff]  ;;  %v1427_v60 = vld [vmem:[%s2414_s11 + $0x82] sm:$0xff] }
  0x4e   : > { %799 = vmatprep.mubr.f32.mxu1 %v2695_v7  ;;  %1821 = vmatprep.subr.bf16.mxu0 %v1820_v3 }
  0x4f   : > { %695 = vmatmul.mubr.f32.gmra.mrb[12].mxu0 %v2621_v40  ;;  %1853 = vmatprep.subr.bf16.mxu1 %v1852_v8 }
  0x50   : > { %800 = vmatmul.mubr.f32.gmra.mrb[12].mxu1 %v2712_v15  ;;  %1823 = vmatpush3.bf16.msra.mxu0 %v1822_v12 }
  0x51   : > { %1855 = vmatpush3.bf16.msra.mxu1 %v1854_v16  ;;  %699 = vmatprep.mubr.f32.mxu0 %v2722_v21 }
  0x52   : > { %804 = vmatprep.mubr.f32.mxu1 %v2732_v27  ;;  %1825 = vmatprep.subr.bf16.mxu0 %v1824_v23 }
  0x53   : > { %700 = vmatmul.mubr.f32.gmra.mrb[14].mxu0 %v2658_v55  ;;  %1857 = vmatprep.subr.bf16.mxu1 %v1856_v28 }
  0x54   : > { %805 = vmatmul.mubr.f32.gmra.mrb[14].mxu1 %v2743_v31  ;;  %1827 = vmatpush3.bf16.msra.mxu0 %v1826_v17 }
  0x55   : > { %1859 = vmatpush3.bf16.msra.mxu1 %v1858_v33  ;;  %874 = vmatprep.mubr.f32.mxu0 %v2564_v18  ;;  %v1868_v18 = vpack.c.bf16 %v589_v41, %v588_v39 }
  0x56   : > { %979 = vmatprep.mubr.f32.mxu1 %v2611_v36  ;;  %1861 = vmatprep.subr.bf16.mxu0 %v1860_v34 }
  0x57   : > { %875 = vmatmul.mubr.f32.vlgmr.msra.gmra.mrb[16].mxu0 %v2539_v6  ;;  %1892 = vmatprep.subr.bf16.mxu1 %v1860_v34  ;;  %v590_v6 = vld [vmem:[%s2979_s1 + $0x430] sm:$0xff] }
  0x58   : > { %980 = vmatmul.mubr.f32.vlgmr.msra.gmra.mrb[16].mxu1 %v2548_v10  ;;  %1863 = vmatpush3.bf16.msra.mxu0 %v1860_v34  ;;  %v1872_v10 = vpack.c.bf16 %v591_v42, %v590_v6 }
  0x59   : > { %1900 = vmatpush3.bf16.msra.mxu1 %v1860_v34  ;;  %879 = vmatprep.mubr.f32.mxu0 %v2601_v32 }
  0x5a   : > { %984 = vmatprep.mubr.f32.mxu1 %v2648_v51  ;;  %1865 = vmatprep.subr.bf16.mxu0 %v1864_v38 }
  0x5b   : > { %880 = vmatmul.mubr.f32.gmra.mrb[18].mxu0 %v2574_v22  ;;  %1893 = vmatprep.subr.bf16.mxu1 %v1864_v38  ;;  %v592_v22 = vld [vmem:[%s2979_s1 + $0x440] sm:$0xff] }
  0x5c   : > { %985 = vmatmul.mubr.f32.gmra.mrb[18].mxu1 %v2584_v26  ;;  %1867 = vmatpush3.bf16.msra.mxu0 %v1864_v38  ;;  %v593_v26 = vld [vmem:[%s2979_s1 + $0x448] sm:$0xff] }
  0x5d   : > { %1901 = vmatpush3.bf16.msra.mxu1 %v1864_v38  ;;  %884 = vmatprep.mubr.f32.mxu0 %v2638_v47  ;;  %v1876_v32 = vpack.c.bf16 %v593_v26, %v592_v22 }
  0x5e   : > { %989 = vmatprep.mubr.f32.mxu1 %v2685_v2  ;;  %1869 = vmatprep.subr.bf16.mxu0 %v1868_v18 }
  0x5f   : > { %885 = vmatmul.mubr.f32.gmra.mrb[20].mxu0 %v2611_v36  ;;  %1894 = vmatprep.subr.bf16.mxu1 %v1868_v18  ;;  %v1416_v36 = vld [vmem:[%s2414_s11 + $0x61] sm:$0xff] }
  0x60   : > { %990 = vmatmul.mubr.f32.gmra.mrb[20].mxu1 %v2621_v40  ;;  %1871 = vmatpush3.bf16.msra.mxu0 %v1868_v18  ;;  %v595_v40 = vld [vmem:[%s2979_s1 + $0x458] sm:$0xff] }
  0x61   : > { %1902 = vmatpush3.bf16.msra.mxu1 %v1868_v18  ;;  %889 = vmatprep.mubr.f32.mxu0 %v2675_v62  ;;  %v1880_v44 = vpack.c.bf16 %v595_v40, %v594_v43 }
  0x62   : > { %994 = vmatprep.mubr.f32.mxu1 %v2722_v21  ;;  %1873 = vmatprep.subr.bf16.mxu0 %v1872_v10 }
  0x63   : > { %890 = vmatmul.mubr.f32.gmra.mrb[22].mxu0 %v2648_v51  ;;  %1895 = vmatprep.subr.bf16.mxu1 %v1872_v10  ;;  %v1418_v51 = vld [vmem:[%s2414_s11 + $0x79] sm:$0xff] }
  0x64   : > { %995 = vmatmul.mubr.f32.gmra.mrb[22].mxu1 %v2658_v55  ;;  %1875 = vmatpush3.bf16.msra.mxu0 %v1872_v10  ;;  %v1401_v55 = vld [vmem:[%s2414_s11 + $0x6a] sm:$0xff]  ;;  %s2831_s11 = sand.u32 1, %s2122_s16  }
  0x65   : > { %1903 = vmatpush3.bf16.msra.mxu1 %v1872_v10  ;;  %894 = vmatprep.mubr.f32.mxu0 %v2712_v15  ;;  %s1372_s30 = sshll.u32 %s2831_s11, 6  ;;  %s1170_s9 = scalar_lea.sflag [#allocation4], %s2831_s11 }
  0x66   : > { %999 = vmatprep.mubr.f32.mxu1 %v1416_v36  ;;  %1877 = vmatprep.subr.bf16.mxu0 %v1876_v32  ;;  %s212_s13 = scalar_lea.vmem [#allocation3], %s1372_s30  ;;  %s2148_s30 = smov [#allocation3]  }
  0x67   : > { %895 = vmatmul.mubr.f32.gmra.mrb[24].mxu0 %v2685_v2  ;;  %1896 = vmatprep.subr.bf16.mxu1 %v1876_v32  ;;  %s1194_s5 = sshll.u32 %s212_s13, 4  ;;  %s1996_s24 = sshll.u32 %s2148_s30, 4  ;;  %s2846_s5 = int_to_ptr.vmem [resolvable:$true] %s1194_s5  ;;  %s1997_s24 = int_to_ptr.vmem [resolvable:$false] %s1996_s24 }
  0x68   : > { %1000 = vmatmul.mubr.f32.gmra.mrb[24].mxu1 %v2695_v7  ;;  %1879 = vmatpush3.bf16.msra.mxu0 %v1876_v32  ;;  %s1992_s10 = scalar_lea.vmem %s2846_s5, 1024  ;;  %s1998_s23 = scalar_lea.vmem %s1997_s24, 2048 }
  0x69   : > { %1904 = vmatpush3.bf16.msra.mxu1 %v1876_v32  ;;  %899 = vmatprep.mubr.f32.mxu0 %v2743_v31  ;;  %p1993_p13 = scmp.ne.s32.totalorder %s2846_s5, %s1992_s10  ;;  %p1999_p2 = scmp.lt.s32.totalorder %s2846_s5, %s1997_s24 }
  0x6a   : > { %1004 = vmatprep.mubr.f32.mxu1 %v1417_v45  ;;  %1881 = vmatprep.subr.bf16.mxu0 %v1880_v44  ;;  %p2000_p4 = scmp.lt.s32.totalorder %s1998_s23, %s1992_s10 }
  0x6b   : > { %900 = vmatmul.mubr.f32.gmra.mrb[26].mxu0 %v2722_v21  ;;  %1897 = vmatprep.subr.bf16.mxu1 %v1880_v44  ;;  %p1994_p0 = pnand %p1993_p13, %p2231_p3 }
  0x6c   : > { %1005 = vmatmul.mubr.f32.gmra.mrb[26].mxu1 %v2732_v27  ;;  %1883 = vmatpush3.bf16.msra.mxu0 %v1880_v44  ;;  %p2001_p5 = por %p2000_p4, %p1999_p2 }
  0x6d   : > { %1905 = vmatpush3.bf16.msra.mxu1 %v1880_v44  ;;  %904 = vmatprep.mubr.f32.mxu0 %v1400_v49  ;;  %p1995_p1 = pneg %p1994_p0 }
  0x6e   : > { %1009 = vmatprep.mubr.f32.mxu1 %v1418_v51  ;;  %1885 = vmatprep.subr.bf16.mxu0 %v1884_v50 }
  0x6f   : > { %905 = vmatmul.mubr.f32.gmra.mrb[28].mxu0 %v1416_v36  ;;  %1898 = vmatprep.subr.bf16.mxu1 %v1884_v50  ;;  %p2002_p6 = pnand %p2001_p5, %p1995_p1 }
  0x70   : > { %1010 = vmatmul.mubr.f32.gmra.mrb[28].mxu1 %v1410_v54  ;;  %1887 = vmatpush3.bf16.msra.mxu0 %v1884_v50 }
  0x71   : > { %1906 = vmatpush3.bf16.msra.mxu1 %v1884_v50  ;;  %909 = vmatprep.mubr.f32.mxu0 %v1401_v55 }
  0x72   : > { %1014 = vmatprep.mubr.f32.mxu1 %v1419_v57  ;;  %1889 = vmatprep.subr.bf16.mxu0 %v1888_v56 }
  0x73   : > { %910 = vmatmul.mubr.f32.gmra.mrb[30].mxu0 %v1417_v45  ;;  %1899 = vmatprep.subr.bf16.mxu1 %v1888_v56 }
  0x74   : > { %1015 = vmatmul.mubr.f32.gmra.mrb[30].mxu1 %v1411_v58  ;;  %1891 = vmatpush3.bf16.msra.mxu0 %v1888_v56 }
  0x75   : > { %1907 = vmatpush3.bf16.msra.mxu1 %v1888_v56  ;;  %1720 = vmatprep.mubr.f32.mxu0 %v2638_v47 }
  0x76   : > { %1726 = vmatprep.mubr.f32.mxu1 %v1400_v49 }
  0x77   : > { %1721 = vmatmul.mubr.f32.vlgmr.msra.gmra.mrb[32].mxu0 %v2675_v62 }
  0x78   : > { %1727 = vmatmul.mubr.f32.vlgmr.msra.gmra.mrb[32].mxu1 %v1401_v55  ;;  %1723 = vmatprep.mubr.f32.mxu0 %v2712_v15 }
  0x79   : > { %1729 = vmatprep.mubr.f32.mxu1 %v1426_v59 }
  0x7b   : > { %1724 = vmatmul.mubr.f32.gmra.mrb[34].mxu0 %v2743_v31 }
  0x7c   : > { %1730 = vmatmul.mubr.f32.gmra.mrb[34].mxu1 %v1427_v60 }
 0x10a   : > { %v1472_v61 = vpop.f32.mrb[0].mxu0 }
 0x10b   : > { %v1528_v63 = vpop.f32.mrb[0].mxu1  ;;  %v1473_v0 = vpop.f32.mrb[1].mxu0 }
 0x10c   : > { %v1474_v1 = vadd.f32 %v1473_v0, %v1472_v61  ;;  %v1529_v2 = vpop.f32.mrb[1].mxu1 }
 0x10d   : > { %v1530_v3 = vadd.f32 %v1529_v2, %v1528_v63 }
 0x10e   : > { %v1475_v4 = vpop.f32.mrb[2].mxu0 }
 0x10f   : > { %v772_v47 = vadd.f32 %v1530_v3, %v1474_v1  ;;  %v1531_v5 = vpop.f32.mrb[2].mxu1  ;;  %v1476_v7 = vpop.f32.mrb[3].mxu0 }
 0x110   : > { %v1477_v8 = vadd.f32 %v1476_v7, %v1475_v4  ;;  %v1532_v62 = vpop.f32.mrb[3].mxu1 }
 0x111   : > { %v1533_v9 = vadd.f32 %v1532_v62, %v1531_v5 }
 0x112   : > { %v1478_v11 = vpop.f32.mrb[4].mxu0 }
 0x113   : > { %v777_v12 = vadd.f32 %v1533_v9, %v1477_v8  ;;  %v1534_v13 = vpop.f32.mrb[4].mxu1  ;;  %v1479_v14 = vpop.f32.mrb[5].mxu0 }
 0x114   : > { %v1480_v15 = vadd.f32 %v1479_v14, %v1478_v11  ;;  %v1535_v16 = vpop.f32.mrb[5].mxu1 }
 0x115   : > { %v1536_v19 = vadd.f32 %v1535_v16, %v1534_v13 }
 0x116   : > { %v1481_v20 = vpop.f32.mrb[6].mxu0 }
 0x117   : > { %v782_v21 = vadd.f32 %v1536_v19, %v1480_v15  ;;  %v1537_v23 = vpop.f32.mrb[6].mxu1  ;;  %v1482_v24 = vpop.f32.mrb[7].mxu0 }
 0x118   : > { %v1483_v25 = vadd.f32 %v1482_v24, %v1481_v20  ;;  %v1538_v27 = vpop.f32.mrb[7].mxu1 }
 0x119   : > { %v1539_v28 = vadd.f32 %v1538_v27, %v1537_v23 }
 0x11a   : > { %v1484_v29 = vpop.f32.mrb[8].mxu0 }
 0x11b   : > { %v787_v30 = vadd.f32 %v1539_v28, %v1483_v25  ;;  %v1540_v17 = vpop.f32.mrb[8].mxu1  ;;  %v1485_v31 = vpop.f32.mrb[9].mxu0 }
 0x11c   : > { %v1486_v33 = vadd.f32 %v1485_v31, %v1484_v29  ;;  %v1541_v34 = vpop.f32.mrb[9].mxu1 }
 0x11d   : > { %v1542_v35 = vadd.f32 %v1541_v34, %v1540_v17 }
 0x11e   : > { %v1487_v37 = vpop.f32.mrb[10].mxu0 }
 0x11f   : > { %v792_v38 = vadd.f32 %v1542_v35, %v1486_v33  ;;  %v1543_v39 = vpop.f32.mrb[10].mxu1  ;;  %v1488_v41 = vpop.f32.mrb[11].mxu0 }
 0x120   : > { %v1489_v18 = vadd.f32 %v1488_v41, %v1487_v37  ;;  %v1544_v6 = vpop.f32.mrb[11].mxu1 }
 0x121   : > { %v1545_v42 = vadd.f32 %v1544_v6, %v1543_v39 }
 0x122   : > { %v1490_v10 = vpop.f32.mrb[12].mxu0 }
 0x123   : > { %v797_v22 = vadd.f32 %v1545_v42, %v1489_v18  ;;  %v1546_v26 = vpop.f32.mrb[12].mxu1  ;;  %v1491_v32 = vpop.f32.mrb[13].mxu0 }
 0x124   : > { %v1492_v36 = vadd.f32 %v1491_v32, %v1490_v10  ;;  %v1547_v43 = vpop.f32.mrb[13].mxu1 }
 0x125   : > { %v1548_v40 = vadd.f32 %v1547_v43, %v1546_v26 }
 0x126   : > { %v1493_v44 = vpop.f32.mrb[14].mxu0 }
 0x127   : > { %v802_v45 = vadd.f32 %v1548_v40, %v1492_v36  ;;  %v1549_v46 = vpop.f32.mrb[14].mxu1  ;;  %v1494_v48 = vpop.f32.mrb[15].mxu0 }
 0x128   : > { %v1495_v49 = vadd.f32 %v1494_v48, %v1493_v44  ;;  %v1550_v50 = vpop.f32.mrb[15].mxu1 }
 0x129   : > { %v1551_v51 = vadd.f32 %v1550_v50, %v1549_v46 }
 0x12a   : > { %v1584_v52 = vpop.f32.mrb[16].mxu0 }
 0x12b   : > { %v2826_v53 = vadd.f32 %v1551_v51, %v1495_v49  ;;  %v1585_v54 = vpop.f32.mrb[17].mxu0  ;;  %v1640_v55 = vpop.f32.mrb[16].mxu1 }
 0x12c   : > { %v1586_v56 = vadd.f32 %v1585_v54, %v1584_v52  ;;  %v1641_v57 = vpop.f32.mrb[17].mxu1 }
 0x12d   : > { %v1642_v58 = vadd.f32 %v1641_v57, %v1640_v55 }
 0x12e   : > { %v877_v59 = vadd.f32 %v1586_v56, %v772_v47  ;;  %v1587_v60 = vpop.f32.mrb[18].mxu0 }
 0x12f   : > { %v1588_v61 = vpop.f32.mrb[19].mxu0  ;;  %v1643_v63 = vpop.f32.mrb[18].mxu1 }
 0x130   : > { %v1589_v0 = vadd.f32 %v1588_v61, %v1587_v60  ;;  %v1644_v1 = vpop.f32.mrb[19].mxu1  ;;  %v982_v2 = vadd.f32 %v1642_v58, %v877_v59 }
 0x131   : > { %v1645_v3 = vadd.f32 %v1644_v1, %v1643_v63 }
 0x132   : > { %v882_v4 = vadd.f32 %v1589_v0, %v777_v12  ;;  %v1590_v5 = vpop.f32.mrb[20].mxu0 }
 0x133   : > { %v1591_v7 = vpop.f32.mrb[21].mxu0  ;;  %v1646_v8 = vpop.f32.mrb[20].mxu1 }
 0x134   : > { %v1592_v62 = vadd.f32 %v1591_v7, %v1590_v5  ;;  %v1647_v9 = vpop.f32.mrb[21].mxu1  ;;  %v987_v11 = vadd.f32 %v1645_v3, %v882_v4 }
 0x135   : > { %v1648_v13 = vadd.f32 %v1647_v9, %v1646_v8 }
 0x136   : > { %v887_v14 = vadd.f32 %v1592_v62, %v782_v21  ;;  %v1593_v15 = vpop.f32.mrb[22].mxu0 }
 0x137   : > { %v1594_v16 = vpop.f32.mrb[23].mxu0  ;;  %v1649_v19 = vpop.f32.mrb[22].mxu1 }
 0x138   : > { %v1595_v47 = vadd.f32 %v1594_v16, %v1593_v15  ;;  %v1650_v20 = vpop.f32.mrb[23].mxu1  ;;  %v2828_v23 = vadd.f32 %v1648_v13, %v887_v14 }
 0x139   : > { %v1651_v24 = vadd.f32 %v1650_v20, %v1649_v19 }
 0x13a   : > { %v892_v25 = vadd.f32 %v1595_v47, %v787_v30  ;;  %v1596_v27 = vpop.f32.mrb[24].mxu0 }
 0x13b   : > { %v1597_v28 = vpop.f32.mrb[25].mxu0  ;;  %v1652_v12 = vpop.f32.mrb[24].mxu1 }
 0x13c   : > { %v1598_v29 = vadd.f32 %v1597_v28, %v1596_v27  ;;  %v1653_v17 = vpop.f32.mrb[25].mxu1  ;;  %v997_v31 = vadd.f32 %v1651_v24, %v892_v25 }
 0x13d   : > { %v1654_v33 = vadd.f32 %v1653_v17, %v1652_v12 }
 0x13e   : > { %v897_v34 = vadd.f32 %v1598_v29, %v792_v38  ;;  %v1599_v35 = vpop.f32.mrb[26].mxu0 }
 0x13f   : > { %v1600_v21 = vpop.f32.mrb[27].mxu0  ;;  %v1655_v37 = vpop.f32.mrb[26].mxu1 }
 0x140   : > { %v1601_v39 = vadd.f32 %v1600_v21, %v1599_v35  ;;  %v1656_v41 = vpop.f32.mrb[27].mxu1  ;;  %v1002_v18 = vadd.f32 %v1654_v33, %v897_v34 }
 0x141   : > { %v1657_v6 = vadd.f32 %v1656_v41, %v1655_v37 }
 0x142   : > { %v902_v42 = vadd.f32 %v1601_v39, %v797_v22  ;;  %v1602_v30 = vpop.f32.mrb[28].mxu0 }
 0x143   : > { %v1603_v10 = vpop.f32.mrb[29].mxu0  ;;  %v1658_v26 = vpop.f32.mrb[28].mxu1 }
 0x144   : > { %v1604_v32 = vadd.f32 %v1603_v10, %v1602_v30  ;;  %v1659_v36 = vpop.f32.mrb[29].mxu1  ;;  %v1007_v43 = vadd.f32 %v1657_v6, %v902_v42 }
 0x145   : > { %v1660_v38 = vadd.f32 %v1659_v36, %v1658_v26 }
 0x146   : > { %v907_v40 = vadd.f32 %v1604_v32, %v802_v45  ;;  %v1605_v44 = vpop.f32.mrb[30].mxu0 }
 0x147   : > { %v1606_v46 = vpop.f32.mrb[31].mxu0  ;;  %v1661_v48 = vpop.f32.mrb[30].mxu1 }
 0x148   : > { %v1607_v49 = vadd.f32 %v1606_v46, %v1605_v44  ;;  %v1662_v50 = vpop.f32.mrb[31].mxu1  ;;  %v1012_v22 = vadd.f32 %v1660_v38, %v907_v40 }
 0x149   : > { %v1663_v51 = vadd.f32 %v1662_v50, %v1661_v48 }
 0x14a   : > { %v912_v52 = vadd.f32 %v1607_v49, %v2826_v53  ;;  %v1722_v54 = vpop.f32.mrb[32].mxu0 }
 0x14b   : > { %v1092_v55 = vadd.f32 %v1722_v54, %v987_v11  ;;  %v1728_v56 = vpop.f32.mrb[32].mxu1  ;;  %v1086_v57 = vpop.f32.mrb[33].mxu0 }
 0x14c   : > { %v2837_v58 = vadd.f32 %v1728_v56, %v1007_v43  ;;  %v1087_v45 = vadd.f32 %v1086_v57, %v982_v2  ;;  %v1106_v59 = vpop.f32.mrb[33].mxu1  ;;  %v1017_v60 = vadd.f32 %v1663_v51, %v912_v52 }
 0x14d   : > { %v1140_v61 = vmul.f32 %v1092_v55, %v1092_v55  ;;  %1162 = vst [vmem:[%s212_s13 + $0x8] sm:$0xff] %v1092_v55  ;;  %v1107_v63 = vadd.f32 %v1106_v59, %v1002_v18 }
 0x14e   : > { %1166 = vst [vmem:[%s212_s13 + $0x28] sm:$0xff] %v2837_v58  ;;  %v1125_v0 = vadd.f32 %v1092_v55, %v1087_v45  ;;  %v1139_v53 = vmul.f32 %v1087_v45, %v1087_v45  ;;  %1161 = vst [vmem:[%s212_s13] sm:$0xff] %v1087_v45  ;;  %v1725_v1 = vpop.f32.mrb[34].mxu0 }
 0x14f   : > { %1165 = vst [vmem:[%s212_s13 + $0x20] sm:$0xff] %v1107_v63  ;;  %v1102_v3 = vadd.f32 %v1725_v1, %v997_v31  ;;  %v1731_v4 = vpop.f32.mrb[34].mxu1  ;;  %v1096_v5 = vpop.f32.mrb[35].mxu0 }
 0x150   : > { %v1147_v7 = vadd.f32 %v1140_v61, %v1139_v53  ;;  %v1122_v2 = vadd.f32 %v1731_v4, %v1017_v60  ;;  %v1097_v8 = vadd.f32 %v1096_v5, %v2828_v23  ;;  %v1116_v62 = vpop.f32.mrb[35].mxu1 }
 0x151   : > { %1164 = vst [vmem:[%s212_s13 + $0x18] sm:$0xff] %v1102_v3  ;;  %v1117_v9 = vadd.f32 %v1116_v62, %v1012_v22  ;;  %v1142_v14 = vmul.f32 %v1102_v3, %v1102_v3 }
 0x152   : > { %1168 = vst [vmem:[%s212_s13 + $0x38] sm:$0xff] %v1122_v2  ;;  %v1126_v11 = vadd.f32 %v1125_v0, %v1097_v8  ;;  %v1141_v13 = vmul.f32 %v1097_v8, %v1097_v8  ;;  %1163 = vst [vmem:[%s212_s13 + $0x10] sm:$0xff] %v1097_v8 }
 0x153   : > { %1167 = vst [vmem:[%s212_s13 + $0x30] sm:$0xff] %v1117_v9 }
 0x154   : > { %v1127_v15 = vadd.f32 %v1126_v11, %v1102_v3  ;;  %v1148_v16 = vadd.f32 %v1147_v7, %v1141_v13 }
 0x155   : > { %2005 = shalt.err (!%p2002_p6)
}
 0x156   : > { %s2006_s12 = scalar_lea.hbm %s2844_s8, 1024  ;;  %s2010_s6 = scalar_lea.hbm %s2980_s2, 8192 }
 0x157   : > { %p2007_p7 = scmp.ne.s32.totalorder %s2844_s8, %s2006_s12  ;;  %p2011_p11 = scmp.lt.u32.totalorder %s2844_s8, %s2980_s2 }
 0x158   : > { %p2012_p12 = scmp.lt.u32.totalorder %s2010_s6, %s2006_s12  ;;  %p2014_p0 = scmp.lt.u32.totalorder %s2006_s12, %s2844_s8 }
 0x159   : > { %p2008_p9 = pnand %p2007_p7, %p2231_p3 }
 0x15a   : > { %p2013_p13 = por %p2012_p12, %p2011_p11 }
 0x15b   : > { %p2009_p10 = pneg %p2008_p9 }
 0x15c   : > { %p2015_p1 = por %p2014_p0, %p2013_p13 }
 0x15e   : > { %p2016_p2 = pnand %p2015_p1, %p2009_p10 }
 0x160   : > { %2019 = shalt.err (!%p2016_p2)
}
 0x161   : > { %s2149_s10 = smov 128   ;;  %s2150_s24 = smov 8   ;;  %v1143_v19 = vmul.f32 %v1107_v63, %v1107_v63  ;;  %v1149_v47 = vadd.f32 %v1148_v16, %v1142_v14  ;;  %v1128_v20 = vadd.f32 %v1127_v15, %v1107_v63  ;;  %v1144_v23 = vmul.f32 %v2837_v58, %v2837_v58 }
 0x162   : > { %1909 = dma.vmem_to_hbm [thread:$0]  (%p2231_p3), %s2846_s5, 1024, %s2844_s8, %s1170_s9, %s2149_s10, %s2149_s10, %s2150_s24   ;;  %v1145_v28 = vmul.f32 %v1117_v9, %v1117_v9  ;;  %v1146_v29 = vmul.f32 %v1122_v2, %v1122_v2 }
 0x163   : > { %v1129_v24 = vadd.f32 %v1128_v20, %v2837_v58  ;;  %v1150_v25 = vadd.f32 %v1149_v47, %v1143_v19  ;;  %s1433_s5 = sshll.u32 %s2134_s19, 2  ;;  %s2988_s9 = sadd.s32 4294967295, %s2146_s22  }
 0x164   : > { %s1208_s8 = sadd.s32 %s2130_s18, %s1433_s5  ;;  %s2879_s23 = sand.u32 1, %s2988_s9  }
 0x165   : > { %v1130_v27 = vadd.f32 %v1129_v24, %v1117_v9  ;;  %v1151_v12 = vadd.f32 %v1150_v25, %v1144_v23  ;;  %s1434_s12 = sshll.u32 %s1208_s8, 4  ;;  %s218_s13 = scalar_lea.vmem [#allocation5], %s2831_s11 }
 0x166   : > { %s1212_s14 = sshll.u32 %s218_s13, 4  ;;  %s2985_s6 = scalar_lea.vmem [#allocation7], %s2831_s11  ;;  %s2890_s14 = int_to_ptr.vmem [resolvable:$true] %s1212_s14 }
 0x167   : > { %v1131_v17 = vadd.f32 %v1130_v27, %v1122_v2  ;;  %v1152_v31 = vadd.f32 %v1151_v12, %v1145_v28  ;;  %s1227_s19 = sshll.u32 %s2985_s6, 4  ;;  %s2888_s18 = scalar_lea.hbm %s2981_s3, %s1434_s12  ;;  %s2897_s19 = int_to_ptr.vmem [resolvable:$true] %s1227_s19 }
 0x168   : > { %s2895_s5 = scalar_lea.hbm %s2982_s4, %s1434_s12  ;;  %s1175_s8 = scalar_lea.sflag [#allocation6], %s2879_s23 }
 0x169   : > { %v1132_v33 = vrot.slane %v1131_v17, 4  ;;  %v1153_v34 = vadd.f32 %v1152_v31, %v1146_v29  ;;  %s2020_s9 = scalar_lea.vmem %s2890_s14, 16  ;;  %s2151_s27 = smov [#allocation5]  }
 0x16a   : > { %p2021_p4 = scmp.ne.s32.totalorder %s2890_s14, %s2020_s9  ;;  %s2024_s30 = sshll.u32 %s2151_s27, 4  ;;  %s2025_s30 = int_to_ptr.vmem [resolvable:$false] %s2024_s30 }
 0x16b   : > { %v1133_v35 = vadd.f32 %v1132_v33, %v1131_v17  ;;  %v1154_v21 = vrot.slane %v1153_v34, 4  ;;  %s2026_s6 = scalar_lea.vmem %s2025_s30, 32  ;;  %p2027_p7 = scmp.lt.s32.totalorder %s2890_s14, %s2025_s30 }
 0x16c   : > { %p2022_p5 = pnand %p2021_p4, %p2231_p3  ;;  %p2028_p9 = scmp.lt.s32.totalorder %s2026_s6, %s2020_s9 }
 0x16d   : > { %v1155_v37 = vadd.f32 %v1154_v21, %v1153_v34  ;;  %v1134_v39 = vrot.slane %v1133_v35, 2 }
 0x16e   : > { %p2023_p6 = pneg %p2022_p5  ;;  %p2029_p10 = por %p2028_p9, %p2027_p7 }
 0x16f   : > { %v1135_v41 = vadd.f32 %v1134_v39, %v1133_v35  ;;  %v1156_v18 = vrot.slane %v1155_v37, 2 }
 0x170   : > { %p2030_p11 = pnand %p2029_p10, %p2023_p6 }
 0x171   : > { %v1136_v6 = vrot.slane %v1135_v41, 1  ;;  %v1157_v42 = vadd.f32 %v1156_v18, %v1155_v37 }
 0x173   : > { %v1137_v30 = vadd.f32 %v1136_v6, %v1135_v41  ;;  %v1158_v10 = vrot.slane %v1157_v42, 1 }
 0x175   : > { %1138 = vst [vmem:[%s218_s13] sm:$0x1] %v1137_v30  ;;  %v1159_v26 = vadd.f32 %v1158_v10, %v1157_v42 }
 0x176   : > { %2033 = shalt.err (!%p2030_p11)
}
 0x177   : > { %s2034_s12 = scalar_lea.hbm %s2888_s18, 16  ;;  %s2038_s24 = scalar_lea.hbm %s2981_s3, 128 }
 0x178   : > { %p2035_p12 = scmp.ne.s32.totalorder %s2888_s18, %s2034_s12  ;;  %p2039_p1 = scmp.lt.u32.totalorder %s2888_s18, %s2981_s3 }
 0x179   : > { %p2040_p2 = scmp.lt.u32.totalorder %s2038_s24, %s2034_s12  ;;  %p2042_p5 = scmp.lt.u32.totalorder %s2034_s12, %s2888_s18 }
 0x17a   : > { %p2036_p13 = pnand %p2035_p12, %p2231_p3 }
 0x17b   : > { %p2041_p4 = por %p2040_p2, %p2039_p1 }
 0x17c   : > { %p2037_p0 = pneg %p2036_p13 }
 0x17d   : > { %p2043_p6 = por %p2042_p5, %p2041_p4 }
 0x17f   : > { %p2044_p7 = pnand %p2043_p6, %p2037_p0 }
 0x181   : > { %2047 = shalt.err (!%p2044_p7)
}
 0x182   : > { %1910 = dma.vmem_to_hbm [thread:$0]  (%p2231_p3), %s2890_s14, 16, %s2888_s18, %s1175_s8  }
 0x183   : > { %s2989_s6 = scalar_lea.vmem [#allocation7], %s2831_s11  ;;  %s2048_s9 = scalar_lea.vmem %s2897_s19, 16 }
 0x184   : > { %1160 = vst [vmem:[%s2989_s6] sm:$0x1] %v1159_v26  ;;  %p2049_p9 = scmp.ne.s32.totalorder %s2897_s19, %s2048_s9  ;;  %s2152_s12 = smov [#allocation7]  }
 0x185   : > { %s2052_s13 = sshll.u32 %s2152_s12, 4  ;;  %s2053_s13 = int_to_ptr.vmem [resolvable:$false] %s2052_s13 }
 0x186   : > { %p2050_p10 = pnand %p2049_p9, %p2231_p3  ;;  %s2054_s10 = scalar_lea.vmem %s2053_s13, 32 }
 0x187   : > { %p2055_p12 = scmp.lt.s32.totalorder %s2897_s19, %s2053_s13  ;;  %p2056_p13 = scmp.lt.s32.totalorder %s2054_s10, %s2048_s9 }
 0x188   : > { %p2051_p11 = pneg %p2050_p10 }
 0x189   : > { %p2057_p0 = por %p2056_p13, %p2055_p12 }
 0x18b   : > { %p2058_p1 = pnand %p2057_p0, %p2051_p11 }
 0x18d   : > { %2061 = shalt.err (!%p2058_p1)
}
 0x18e   : > { %s2062_s11 = scalar_lea.hbm %s2895_s5, 16  ;;  %s2066_s24 = scalar_lea.hbm %s2982_s4, 128 }
 0x18f   : > { %p2063_p2 = scmp.ne.s32.totalorder %s2895_s5, %s2062_s11  ;;  %p2067_p6 = scmp.lt.u32.totalorder %s2895_s5, %s2982_s4 }
 0x190   : > { %p2068_p7 = scmp.lt.u32.totalorder %s2066_s24, %s2062_s11  ;;  %p2070_p10 = scmp.lt.u32.totalorder %s2062_s11, %s2895_s5 }
 0x191   : > { %p2064_p4 = pnand %p2063_p2, %p2231_p3 }
 0x192   : > { %p2069_p9 = por %p2068_p7, %p2067_p6 }
 0x193   : > { %p2065_p5 = pneg %p2064_p4 }
 0x194   : > { %p2071_p11 = por %p2070_p10, %p2069_p9 }
 0x196   : > { %p2072_p12 = pnand %p2071_p11, %p2065_p5 }
 0x198   : > { %2075 = shalt.err (!%p2072_p12)
}
 0x199   : > { %1911 = dma.vmem_to_hbm [thread:$0]  (%p2231_p3), %s2897_s19, 16, %s2895_s5, %s1175_s8  }
 0x19a PF: > { %p1925_p13 = scmp.ge.s32.totalorder %s2146_s22, 2  ;;  %s1239_s6 = sand.u32 1, %s2118_s15  }
 0x19b   : > { %s1240_s9 = scalar_lea.sflag [#allocation4], %s1239_s6 }
 0x19c   : > { %p1916_p0 = pnand %p1925_p13, %p2242_p8 }
 0x19e   : > { %2109 = dma.done.wait (!%p1916_p0), %s1240_s9, 1024  }
 0x19f   : > { %2111 = vsyncadd (!%p1916_p0), %s1240_s9, 4294966272  ;;  %s2990_s12 = sadd.s32 4294967294, %s2146_s22  }
 0x1a0   : > { %s1248_s13 = sand.u32 1, %s2990_s12  }
 0x1a1   : > { %s1249_s28 = scalar_lea.sflag [#allocation6], %s1248_s13 }
 0x1a2   : > { %2113 = dma.done.wait (!%p1916_p0), %s1249_s28, 32  }
 0x1a3   : > { %2115 = vsyncadd (!%p1916_p0), %s1249_s28, 4294967264  ;;  %s21_s22 = sadd.s32 1, %s2146_s22   ;;  %s2991_s15 = smov %s2122_s16 }
 0x1a4   : > { %p18_p3 = scmp.ge.s32.totalorder %s21_s22, 10   ;;  %s2992_s16 = smov %s2126_s17 }
 0x1a5   : > { %s2993_s17 = smov %s2251_s7  ;;  %s2994_s18 = smov %s2138_s20 }
 0x1a6   : > { %s2995_s19 = smov %s2142_s21  ;;  %s2996_s20 = smov %s2999_s25 }
 0x1a7   : > { %s2997_s21 = smov %s3003_s26  ;;  %20 = sbr.rel (!%p18_p3) target bundleno = 7 (0x7), region = 98 }
 0x1ae   :  { %1261 = vsyncpa [#allocation4], 1 }
 0x1af   :  { %1263 = vsyncpa [#allocation4 + $0x1], 1 }
 0x1b0   :  { %1264 = vsyncpa [#allocation6], 1 }
 0x1b1   :  { %1266 = vsyncpa [#allocation6 + $0x1], 1 }

</bundles_post_ra>
